<compile_context>
chip_gen: v7x
topology: tpu7x:2x2x1
jax: 0.10.0
libtpu: 0.0.40
codegen_flags: <defaults>
</compile_context>

<pallas_src>
import math
import functools

import jax
import jax.numpy as jnp
from jax.experimental import pallas as pl
from jax.experimental.pallas import tpu as pltpu


def _round_up(x, m):
    return ((x + m - 1) // m) * m


def _from_rgb_kernel(x_ref, w1_ref, b1_ref, w2_ref, b2_ref, o_ref):
    # x_ref : (tm, K1p)    bf16 im2col patches tile
    # w1_ref: (K1p, C_mid) bf16 3x3 weight, already [K, N]
    # b1_ref: (1,  C_mid)  f32
    # w2_ref: (C_mid, Np)  bf16 1x1 weight, already [K, N] (N padded to 128-mult)
    # b2_ref: (1,  Np)     f32
    # o_ref : (tm, Np)
    h = jnp.dot(x_ref[...], w1_ref[...], preferred_element_type=jnp.float32)
    h = h + b1_ref[...]
    # nn.LeakyReLU() default negative_slope = 0.01
    h = jnp.where(h >= 0.0, h, jnp.float32(0.01) * h)
    h = h.astype(w2_ref.dtype)
    out = jnp.dot(h, w2_ref[...], preferred_element_type=jnp.float32)
    out = out + b2_ref[...]
    o_ref[...] = out.astype(o_ref.dtype)


@functools.partial(jax.jit, static_argnames=("tm", "allow_fusion", "data_format"))
def _from_rgb_impl(x, w1, b1, w2, b2, *, tm, allow_fusion, data_format):
    if data_format == "NCHW":
        x_nhwc = jnp.transpose(x, (0, 2, 3, 1))
    elif data_format == "NHWC":
        x_nhwc = x
    else:
        raise ValueError(f"unsupported data_format: {data_format}")

    B, H, W, C_in = x_nhwc.shape
    C_mid = w1.shape[0]
    C_out = w2.shape[0]

    # ---- wrapper-side layout plumbing (fused by XLA under jit) ----
    x_pad = jnp.pad(x_nhwc, ((0, 0), (1, 1), (1, 1), (0, 0)))
    # im2col, K ordering (kh, kw, ci) to match the weight transpose below.
    patches = jnp.concatenate(
        [x_pad[:, kh:kh + H, kw:kw + W, :] for kh in range(3) for kw in range(3)],
        axis=-1,
    )                                                     # [B, H, W, 9*C_in]
    M = B * H * W
    K1 = 9 * C_in
    K1p = _round_up(K1, 16)      # align rows/sublanes; NOT 128 (keeps HBM bytes low)
    patches = patches.reshape(M, K1)

    # Weights pre-transposed to [K, N] once (no per-tile transpose in-kernel).
    w1_mat = jnp.transpose(w1, (2, 3, 1, 0)).reshape(K1, C_mid)   # (kh,kw,ci) x co
    w2_mat = jnp.transpose(w2[:, :, 0, 0], (1, 0))                # [C_mid, C_out]
    if K1p != K1:
        patches = jnp.pad(patches, ((0, 0), (0, K1p - K1)))
        w1_mat = jnp.pad(w1_mat, ((0, K1p - K1), (0, 0)))

    # Lane-dense output store: pad C_out up to a multiple of 128.
    Np = max(128, _round_up(C_out, 128))
    if Np != C_out:
        w2_mat = jnp.pad(w2_mat, ((0, 0), (0, Np - C_out)))
        b2 = jnp.pad(b2, (0, Np - C_out))

    # bf16 MXU operands; f32 biases (added in the f32 accumulator).
    patches = patches.astype(jnp.bfloat16)
    w1_mat = w1_mat.astype(jnp.bfloat16)
    w2_mat = w2_mat.astype(jnp.bfloat16)
    b1_2d = b1.astype(jnp.float32).reshape(1, C_mid)
    b2_2d = b2.astype(jnp.float32).reshape(1, Np)

    # Row tile: multiple of 8, big enough to amortize per-step overhead, capped
    # so the "parallel" grid keeps >= 2 steps (v7x megacore gets both cores fed).
    tm = max(8, _round_up(min(int(tm), M), 8))
    tm = min(tm, max(8, _round_up(pl.cdiv(M, 2), 8)))
    Mp = pl.cdiv(M, tm) * tm
    if Mp != M:
        patches = jnp.pad(patches, ((0, Mp - M), (0, 0)))

    out_itemsize = jnp.dtype(x.dtype).itemsize
    cost = pl.CostEstimate(
        flops=2 * Mp * K1p * C_mid + 2 * Mp * C_mid * Np,
        transcendentals=0,
        bytes_accessed=int(
            2 * (Mp * K1p + K1p * C_mid + C_mid * Np)     # bf16 operands
            + 4 * (C_mid + Np)                            # f32 biases
            + out_itemsize * Mp * Np                      # output
        ),
    )

    compiler_kwargs = dict(
        dimension_semantics=("parallel",),
        vmem_limit_bytes=48 * 1024 * 1024,
    )
    if allow_fusion:
        # Let XLA fuse the pad/slice/concat im2col into the patches operand so
        # the 9x-expanded array is not materialized in HBM.
        compiler_kwargs["allow_input_fusion"] = [True, False, False, False, False]

    out_flat = pl.pallas_call(
        _from_rgb_kernel,
        out_shape=jax.ShapeDtypeStruct((Mp, Np), x.dtype),
        grid_spec=pltpu.PrefetchScalarGridSpec(
            num_scalar_prefetch=0,
            grid=(Mp // tm,),
            in_specs=[
                pl.BlockSpec((tm, K1p), lambda i: (i, 0)),      # patches row tile
                # TODO(synk): sweep pipeline_mode=pl.Buffered(1) on the four
                # constant-index weight/bias specs to trim resident VMEM.
                pl.BlockSpec((K1p, C_mid), lambda i: (0, 0)),   # 3x3 weight [K,N]
                pl.BlockSpec((1, C_mid), lambda i: (0, 0)),     # bias1
                pl.BlockSpec((C_mid, Np), lambda i: (0, 0)),    # 1x1 weight [K,N]
                pl.BlockSpec((1, Np), lambda i: (0, 0)),        # bias2 (padded)
            ],
            out_specs=pl.BlockSpec((tm, Np), lambda i: (i, 0)),
        ),
        compiler_params=pltpu.CompilerParams(**compiler_kwargs),
        cost_estimate=cost,
    )(patches, w1_mat, b1_2d, w2_mat, b2_2d)

    out = out_flat[:M, :C_out].reshape(B, H, W, C_out)
    if data_format == "NCHW":
        out = jnp.transpose(out, (0, 3, 1, 2))
    return out


def from_rgb(x, w1, b1, w2, b2, *, tm=512, data_format="NCHW"):
    """FromRGB forward.

    x : [B, C_in, H, W] ("NCHW", matching the PyTorch module) or [B, H, W, C_in]
        when data_format="NHWC".
    w1: [256, C_in, 3, 3], b1: [256]      (3x3 conv, padding='same')
    w2: [C_out, 256, 1, 1], b2: [C_out]   (1x1 conv)
    """
    try:
        out = _from_rgb_impl(x, w1, b1, w2, b2, tm=tm, allow_fusion=True,
                             data_format=data_format)
        return jax.block_until_ready(out)
    except Exception:
        # Fallback if this jax/libtpu build rejects the input-fusion hint.
        return _from_rgb_impl(x, w1, b1, w2, b2, tm=tm, allow_fusion=False,
                              data_format=data_format)


def _reference(x, w1, b1, w2, b2):
    dn = ("NCHW", "OIHW", "NCHW")
    h = jax.lax.conv_general_dilated(
        x, w1, window_strides=(1, 1), padding="SAME", dimension_numbers=dn
    )
    h = h + b1.reshape(1, -1, 1, 1)
    h = jnp.where(h >= 0.0, h, 0.01 * h)
    o = jax.lax.conv_general_dilated(
        h, w2, window_strides=(1, 1), padding="SAME", dimension_numbers=dn
    )
    return o + b2.reshape(1, -1, 1, 1)


if __name__ == "__main__":
    key = jax.random.PRNGKey(0)
    k_x, k_w1, k_b1, k_w2, k_b2 = jax.random.split(key, 5)

    B, C_in, H, W = 2, 4, 16, 16
    C_mid, C_out = 256, 128   # C_mid fixed at 256 by the module

    x = jax.random.normal(k_x, (B, C_in, H, W), dtype=jnp.float32)
    w1 = jax.random.normal(k_w1, (C_mid, C_in, 3, 3), dtype=jnp.float32) / math.sqrt(9 * C_in)
    b1 = 0.05 * jax.random.normal(k_b1, (C_mid,), dtype=jnp.float32)
    w2 = jax.random.normal(k_w2, (C_out, C_mid, 1, 1), dtype=jnp.float32) / math.sqrt(C_mid)
    b2 = 0.05 * jax.random.normal(k_b2, (C_out,), dtype=jnp.float32)

    out = from_rgb(x, w1, b1, w2, b2, tm=512)
    out = jax.block_until_ready(out)

    ref = _reference(x, w1, b1, w2, b2)

    assert out.shape == (B, C_out, H, W)
    err = float(jnp.max(jnp.abs(out - ref)))
    # bf16 matmul operands vs. f32 reference; accumulation stays f32 in-kernel.
    assert jnp.allclose(out, ref, atol=5e-2, rtol=5e-2), err
    print("KERNEL_OK")
</pallas_src>

<mosaic_0001>
module attributes {stable_mosaic.version = 11 : i64} {
  func.func @_from_rgb_kernel(%arg0: i32, %arg1: memref<256x48xbf16, #tpu.memory_space<vmem>>, %arg2: memref<48x256xbf16, #tpu.memory_space<vmem>>, %arg3: memref<1x256xf32, #tpu.memory_space<vmem>>, %arg4: memref<256x128xbf16, #tpu.memory_space<vmem>>, %arg5: memref<1x128xf32, #tpu.memory_space<vmem>>, %arg6: memref<256x128xf32, #tpu.memory_space<vmem>>) attributes {dimension_semantics = [#tpu.dimension_semantics<parallel>], iteration_bounds = array<i64: 2>, scalar_prefetch = 0 : i64, scratch_operands = 0 : i64, tpu.core_type = #tpu.core_type<tc>, window_params = [{transform_indices = @transform_0, window_bounds = array<i64: 256, 48>}, {pipeline_mode = #tpu.pipeline_mode<synchronous>, transform_indices = @transform_1, window_bounds = array<i64: 48, 256>}, {pipeline_mode = #tpu.pipeline_mode<synchronous>, transform_indices = @transform_2, window_bounds = array<i64: 1, 256>}, {pipeline_mode = #tpu.pipeline_mode<synchronous>, transform_indices = @transform_3, window_bounds = array<i64: 256, 128>}, {pipeline_mode = #tpu.pipeline_mode<synchronous>, transform_indices = @transform_4, window_bounds = array<i64: 1, 128>}, {transform_indices = @transform_5, window_bounds = array<i64: 256, 128>}]} {
    %c0 = arith.constant 0 : index
    %c0_0 = arith.constant 0 : index
    %0 = vector.load %arg1[%c0, %c0_0] : memref<256x48xbf16, #tpu.memory_space<vmem>>, vector<256x48xbf16>
    %c0_1 = arith.constant 0 : index
    %c0_2 = arith.constant 0 : index
    %1 = vector.load %arg2[%c0_1, %c0_2] : memref<48x256xbf16, #tpu.memory_space<vmem>>, vector<48x256xbf16>
    %cst = arith.constant dense<0.000000e+00> : vector<256x256xf32>
    %2 = tpu.matmul %0, %1, %cst {dimension_numbers = #tpu.dot_dimension_numbers<[1], [0], [0], [1], [0, 0, 1, 1], [], []>} : vector<256x48xbf16>, vector<48x256xbf16>, vector<256x256xf32> -> vector<256x256xf32>
    %c0_3 = arith.constant 0 : index
    %c0_4 = arith.constant 0 : index
    %3 = vector.load %arg3[%c0_3, %c0_4] : memref<1x256xf32, #tpu.memory_space<vmem>>, vector<1x256xf32>
    %4 = vector.broadcast %3 : vector<1x256xf32> to vector<256x256xf32>
    %5 = arith.addf %2, %4 : vector<256x256xf32>
    %cst_5 = arith.constant 0.000000e+00 : f32
    %6 = vector.broadcast %cst_5 : f32 to vector<256x256xf32>
    %7 = arith.cmpf oge, %5, %6 : vector<256x256xf32>
    %cst_6 = arith.constant 0.00999999977 : f32
    %8 = vector.broadcast %cst_6 : f32 to vector<256x256xf32>
    %9 = arith.mulf %8, %5 : vector<256x256xf32>
    %10 = arith.select %7, %5, %9 : vector<256x256xi1>, vector<256x256xf32>
    %11 = arith.truncf %10 : vector<256x256xf32> to vector<256x256xbf16>
    %c0_7 = arith.constant 0 : index
    %c0_8 = arith.constant 0 : index
    %12 = vector.load %arg4[%c0_7, %c0_8] : memref<256x128xbf16, #tpu.memory_space<vmem>>, vector<256x128xbf16>
    %cst_9 = arith.constant dense<0.000000e+00> : vector<256x128xf32>
    %13 = tpu.matmul %11, %12, %cst_9 {dimension_numbers = #tpu.dot_dimension_numbers<[1], [0], [0], [1], [0, 0, 1, 1], [], []>} : vector<256x256xbf16>, vector<256x128xbf16>, vector<256x128xf32> -> vector<256x128xf32>
    %c0_10 = arith.constant 0 : index
    %c0_11 = arith.constant 0 : index
    %14 = vector.load %arg5[%c0_10, %c0_11] : memref<1x128xf32, #tpu.memory_space<vmem>>, vector<1x128xf32>
    %15 = vector.broadcast %14 : vector<1x128xf32> to vector<256x128xf32>
    %16 = arith.addf %13, %15 : vector<256x128xf32>
    %c0_12 = arith.constant 0 : index
    %c0_13 = arith.constant 0 : index
    %17 = vector.load %arg6[%c0_12, %c0_13] : memref<256x128xf32, #tpu.memory_space<vmem>>, vector<256x128xf32>
    tpu.vector_store %arg6[%c0_12, %c0_13], %16 {strides = array<i32>} : memref<256x128xf32, #tpu.memory_space<vmem>>, vector<256x128xf32>,
    return
  }
  func.func @transform_0(%arg0: i32) -> (i32, i32) {
    %c0_i32 = arith.constant 0 : i32
    %c0_i32_0 = arith.constant 0 : i32
    return %arg0, %c0_i32 : i32, i32
  }
  func.func @transform_1(%arg0: i32) -> (i32, i32) {
    %c0_i32 = arith.constant 0 : i32
    %c0_i32_0 = arith.constant 0 : i32
    %c0_i32_1 = arith.constant 0 : i32
    return %c0_i32, %c0_i32_0 : i32, i32
  }
  func.func @transform_2(%arg0: i32) -> (i32, i32) {
    %c0_i32 = arith.constant 0 : i32
    %c0_i32_0 = arith.constant 0 : i32
    %c0_i32_1 = arith.constant 0 : i32
    return %c0_i32, %c0_i32_0 : i32, i32
  }
  func.func @transform_3(%arg0: i32) -> (i32, i32) {
    %c0_i32 = arith.constant 0 : i32
    %c0_i32_0 = arith.constant 0 : i32
    %c0_i32_1 = arith.constant 0 : i32
    return %c0_i32, %c0_i32_0 : i32, i32
  }
  func.func @transform_4(%arg0: i32) -> (i32, i32) {
    %c0_i32 = arith.constant 0 : i32
    %c0_i32_0 = arith.constant 0 : i32
    %c0_i32_1 = arith.constant 0 : i32
    return %c0_i32, %c0_i32_0 : i32, i32
  }
  func.func @transform_5(%arg0: i32) -> (i32, i32) {
    %c0_i32 = arith.constant 0 : i32
    %c0_i32_0 = arith.constant 0 : i32
    return %arg0, %c0_i32 : i32, i32
  }
}

module attributes {stable_mosaic.version = 11 : i64} {
  func.func @_from_rgb_kernel(%arg0: i32, %arg1: memref<256x48xbf16, #tpu.memory_space<vmem>>, %arg2: memref<48x256xbf16, #tpu.memory_space<vmem>>, %arg3: memref<1x256xf32, #tpu.memory_space<vmem>>, %arg4: memref<256x128xbf16, #tpu.memory_space<vmem>>, %arg5: memref<1x128xf32, #tpu.memory_space<vmem>>, %arg6: memref<256x128xf32, #tpu.memory_space<vmem>>) attributes {dimension_semantics = [#tpu.dimension_semantics<parallel>], iteration_bounds = array<i64: 2>, scalar_prefetch = 0 : i64, scratch_operands = 0 : i64, tpu.core_type = #tpu.core_type<tc>, window_params = [{transform_indices = @transform_0, window_bounds = array<i64: 256, 48>}, {pipeline_mode = #tpu.pipeline_mode<synchronous>, transform_indices = @transform_1, window_bounds = array<i64: 48, 256>}, {pipeline_mode = #tpu.pipeline_mode<synchronous>, transform_indices = @transform_2, window_bounds = array<i64: 1, 256>}, {pipeline_mode = #tpu.pipeline_mode<synchronous>, transform_indices = @transform_3, window_bounds = array<i64: 256, 128>}, {pipeline_mode = #tpu.pipeline_mode<synchronous>, transform_indices = @transform_4, window_bounds = array<i64: 1, 128>}, {transform_indices = @transform_5, window_bounds = array<i64: 256, 128>}]} {
    %c0 = arith.constant 0 : index
    %c0_0 = arith.constant 0 : index
    %0 = vector.load %arg1[%c0, %c0_0] : memref<256x48xbf16, #tpu.memory_space<vmem>>, vector<256x48xbf16>
    %c0_1 = arith.constant 0 : index
    %c0_2 = arith.constant 0 : index
    %1 = vector.load %arg2[%c0_1, %c0_2] : memref<48x256xbf16, #tpu.memory_space<vmem>>, vector<48x256xbf16>
    %cst = arith.constant dense<0.000000e+00> : vector<256x256xf32>
    %2 = tpu.matmul %0, %1, %cst {dimension_numbers = #tpu.dot_dimension_numbers<[1], [0], [0], [1], [0, 0, 1, 1], [], []>} : vector<256x48xbf16>, vector<48x256xbf16>, vector<256x256xf32> -> vector<256x256xf32>
    %c0_3 = arith.constant 0 : index
    %c0_4 = arith.constant 0 : index
    %3 = vector.load %arg3[%c0_3, %c0_4] : memref<1x256xf32, #tpu.memory_space<vmem>>, vector<1x256xf32>
    %4 = vector.broadcast %3 : vector<1x256xf32> to vector<256x256xf32>
    %5 = arith.addf %2, %4 : vector<256x256xf32>
    %cst_5 = arith.constant 0.000000e+00 : f32
    %6 = vector.broadcast %cst_5 : f32 to vector<256x256xf32>
    %7 = arith.cmpf oge, %5, %6 : vector<256x256xf32>
    %cst_6 = arith.constant 0.00999999977 : f32
    %8 = vector.broadcast %cst_6 : f32 to vector<256x256xf32>
    %9 = arith.mulf %8, %5 : vector<256x256xf32>
    %10 = arith.select %7, %5, %9 : vector<256x256xi1>, vector<256x256xf32>
    %11 = arith.truncf %10 : vector<256x256xf32> to vector<256x256xbf16>
    %c0_7 = arith.constant 0 : index
    %c0_8 = arith.constant 0 : index
    %12 = vector.load %arg4[%c0_7, %c0_8] : memref<256x128xbf16, #tpu.memory_space<vmem>>, vector<256x128xbf16>
    %cst_9 = arith.constant dense<0.000000e+00> : vector<256x128xf32>
    %13 = tpu.matmul %11, %12, %cst_9 {dimension_numbers = #tpu.dot_dimension_numbers<[1], [0], [0], [1], [0, 0, 1, 1], [], []>} : vector<256x256xbf16>, vector<256x128xbf16>, vector<256x128xf32> -> vector<256x128xf32>
    %c0_10 = arith.constant 0 : index
    %c0_11 = arith.constant 0 : index
    %14 = vector.load %arg5[%c0_10, %c0_11] : memref<1x128xf32, #tpu.memory_space<vmem>>, vector<1x128xf32>
    %15 = vector.broadcast %14 : vector<1x128xf32> to vector<256x128xf32>
    %16 = arith.addf %13, %15 : vector<256x128xf32>
    %c0_12 = arith.constant 0 : index
    %c0_13 = arith.constant 0 : index
    %17 = vector.load %arg6[%c0_12, %c0_13] : memref<256x128xf32, #tpu.memory_space<vmem>>, vector<256x128xf32>
    tpu.vector_store %arg6[%c0_12, %c0_13], %16 {strides = array<i32>} : memref<256x128xf32, #tpu.memory_space<vmem>>, vector<256x128xf32>,
    return
  }
  func.func @transform_0(%arg0: i32) -> (i32, i32) {
    %c0_i32 = arith.constant 0 : i32
    %c0_i32_0 = arith.constant 0 : i32
    return %arg0, %c0_i32 : i32, i32
  }
  func.func @transform_1(%arg0: i32) -> (i32, i32) {
    %c0_i32 = arith.constant 0 : i32
    %c0_i32_0 = arith.constant 0 : i32
    %c0_i32_1 = arith.constant 0 : i32
    return %c0_i32, %c0_i32_0 : i32, i32
  }
  func.func @transform_2(%arg0: i32) -> (i32, i32) {
    %c0_i32 = arith.constant 0 : i32
    %c0_i32_0 = arith.constant 0 : i32
    %c0_i32_1 = arith.constant 0 : i32
    return %c0_i32, %c0_i32_0 : i32, i32
  }
  func.func @transform_3(%arg0: i32) -> (i32, i32) {
    %c0_i32 = arith.constant 0 : i32
    %c0_i32_0 = arith.constant 0 : i32
    %c0_i32_1 = arith.constant 0 : i32
    return %c0_i32, %c0_i32_0 : i32, i32
  }
  func.func @transform_4(%arg0: i32) -> (i32, i32) {
    %c0_i32 = arith.constant 0 : i32
    %c0_i32_0 = arith.constant 0 : i32
    %c0_i32_1 = arith.constant 0 : i32
    return %c0_i32, %c0_i32_0 : i32, i32
  }
  func.func @transform_5(%arg0: i32) -> (i32, i32) {
    %c0_i32 = arith.constant 0 : i32
    %c0_i32_0 = arith.constant 0 : i32
    return %arg0, %c0_i32 : i32, i32
  }
}

</mosaic_0001>

<bundles_post_ra>
// kernel: _from_rgb_impl.2
= control target key start
LH: loop header
LB: loop body
LE: loop exit
PB: predicated region body
PF: predicated region fallthrough
CT: control target
= control target key end

     0   :  { %s2899_s0 = inlined_call_operand.vmem [shape: bf16[48,256], index: 0, kind: input, shape index: {}]   ;;  %s2900_s1 = inlined_call_operand.vmem [shape: f32[1,256], index: 1, kind: input, shape index: {}]   ;;  %s2901_s2 = inlined_call_operand.vmem [shape: bf16[256,128], index: 2, kind: input, shape index: {}]   ;;  %s2902_s3 = inlined_call_operand.vmem [shape: f32[1,128], index: 3, kind: input, shape index: {}]   ;;  %s2903_s4 = inlined_call_operand.vmem [shape: bf16[512,36], index: 4, kind: input, shape index: {}]   ;;  %s2904_s5 = inlined_call_operand.<no memory space> [shape: bf16[], index: 5, kind: input, shape index: {}]   ;;  %s2905_s6 = inlined_call_operand.hbm [shape: f32[512,128], index: 6, kind: output, shape index: {}]  }
   0x1   :  { %v11_v0 = vstv %s2904_s5 }
   0x2   :  { %v2383_v1 = vunpack.i.l.bf16 %v11_v0 }
   0x3   :  { %16 = vsyncpa [#allocation8], 0 }
   0x4   :  { %18 = vsyncpa [#allocation8 + $0x1], 0  ;;  %s2385_s23 = smov 0   ;;  %s2387_s24 = smov 0  }
   0x5   :  { %s2389_s25 = smov 0   ;;  %s2391_s26 = smov 0  }
   0x6 LB: > { %s2406_s5 = sadd.s32 4294967295, %s2338_s26   ;;  %s1965_s27 = sadd.s32 4294967294, %s2338_s26   ;;  %s2338_s26 = sphi %s2391_s26, %s2911_s26   ;;  %s2334_s25 = sphi %s2389_s25, %s2910_s25   ;;  %s2330_s24 = sphi %s2387_s24, %s2909_s24   ;;  %s2326_s23 = sphi %s2385_s23, %s2908_s23  }
   0x7   : > { %s2410_s28 = sadd.s32 1, %s2338_s26   ;;  %s141_s29 = sadd.s32 1, %s2334_s25 }
   0x8   : > { %s138_s30 = ssub.s32 %s2338_s26, %s2410_s28  ;;  %p151_p0 = scmp.ne.s32.totalorder %s2334_s25, %s2330_s24 }
   0x9   : > { %p139_p1 = scmp.eq.s32.totalorder %s138_s30, 0  ;;  %p152_p2 = scmp.eq.s32.totalorder %s2406_s5, 1 }
   0xa   : > { %p157_p3 = scmp.ne.s32.totalorder %s2330_s24, %s2326_s23  ;;  %p158_p4 = scmp.eq.s32.totalorder %s1965_s27, 1 }
   0xb   : > { %s2421_s7 = scalar_select %p139_p1, %s2334_s25, %s141_s29  }
   0xc   : > { %p2423_p5 = por %p152_p2, %p151_p0  ;;  %p2427_p6 = por %p158_p4, %p157_p3 }
   0xd   : > { %p1968_p7 = scmp.ge.s32.totalorder %s2338_s26, 1  ;;  %p197_p8 = scmp.lt.s32.totalorder %s2338_s26, 3 }
   0xf   : > { %p198_p9 = pnand %p1968_p7, %p197_p8 }
  0x11   : > { %201 = sbr.rel (%p198_p9) target bundleno = 621 (0x26d), region = 40 }
  0x18   : > { %v2235_v2 = vld [vmem:[%s2899_s0 + $0x4] ss:$8 sps:$4 sm:$0xff]   ;;  %s1970_s12 = sshll.u32 %s2406_s5, 5  ;;  %v244_v3 = vlaneseq  ;;  %v2237_v4 = vld [vmem:[%s2899_s0] ss:$8 sps:$4 sm:$0xff]   ;;  %v2340_v5 = vmov 0  }
  0x19   : > { %1176 = vmatprep.mubr.bf16.mxu0 %v2340_v5  ;;  %p226_p10 = scmp.lt.s32.totalorder %s1970_s12, 63  ;;  %1144 = vmatprep.subr.bf16.mxu0 %v2235_v2  ;;  %v2238_v6 = vld [vmem:[%s2899_s0 + $0x14] ss:$8 sps:$4 sm:$0xff]   ;;  %v2240_v7 = vld [vmem:[%s2899_s0 + $0x10] ss:$8 sps:$4 sm:$0xff]   ;;  %v2341_v25 = vmov 0.0  }
  0x1a   : > { %1145 = vmatpush1.bf16.msra.mxu0 %v2237_v4  ;;  %v2448_v8 = vand.u32 127, %v244_v3  ;;  %v2241_v9 = vld [vmem:[%s2899_s0 + $0x24] ss:$8 sps:$4 sm:$0xff]   ;;  %v2243_v10 = vld [vmem:[%s2899_s0 + $0x20] ss:$8 sps:$4 sm:$0xff]   ;;  %vm1095_vm1 = vcmask 392192  }
  0x1b   : > { %s2913_s12 = smov (!%p226_p10, %s1970_s12), 63  ;;  %1146 = vmatprep.subr.bf16.mxu0 %v2238_v6  ;;  %v2260_v46 = vld [vmem:[%s2901_s2 + $0x40] sm:$0xff]   ;;  %v2522_v59 = vld [vmem:[%s2901_s2 + $0x48] sm:$0xff]   ;;  %s222_s13 = sand.u32 1, %s2330_s24  }
  0x1c   : > { %s1971_s21 = sshll.u32 %s2913_s12, 2  ;;  %vm247_vm0 = vcmp.lt.s32.totalorder %v2448_v8, 36  ;;  %v2509_v52 = vld [vmem:[%s2901_s2] sm:$0xff]   ;;  %2176 = vmatprep.subr.bf16.mxu1 %v2260_v46  ;;  %s1969_s14 = sshll.u32 %s222_s13, 8 }
  0x1d   : > { %s2459_s10 = scalar_lea.vmem %s2903_s4, %s1971_s21  ;;  %2184 = vmatpush3.bf16.msra.mxu1 %v2509_v52  ;;  %v2269_v8 = vld [vmem:[%s2901_s2 + $0x20] sm:$0xff]   ;;  %s2782_s17 = scalar_lea.vmem [#allocation7], %s1969_s14 }
  0x1e   : > { %1147 = vmatpush1.bf16.msra.mxu0 %v2240_v7  ;;  %v241_v11 = vld [vmem:[%s2459_s10] sm:$0xff]   ;;  %v1973_v12 = vld [vmem:[%s2459_s10 + $0x8] sm:$0xff]   ;;  %v1975_v13 = vld [vmem:[%s2459_s10 + $0x10] sm:$0xff]   ;;  %2177 = vmatprep.subr.bf16.mxu1 %v2522_v59  ;;  %s2063_s18 = sshll.u32 %s2406_s5, 12  ;;  %s1903_s19 = sshll.u32 %s2782_s17, 4  ;;  %s2851_s19 = int_to_ptr.vmem [resolvable:$true] %s1903_s19 }
  0x1f   : > { %1148 = vmatprep.subr.bf16.mxu0 %v2241_v9  ;;  %v242_v14 = vunpack.c.l.bf16 %v241_v11  ;;  %v263_v15 = vunpack.c.h.bf16 %v241_v11  ;;  %v1977_v16 = vld [vmem:[%s2459_s10 + $0x18] sm:$0xff]   ;;  %v285_v17 = vunpack.c.l.bf16 %v1973_v12  ;;  %v307_v18 = vunpack.c.h.bf16 %v1973_v12  ;;  %v1979_v30 = vld [vmem:[%s2459_s10 + $0x20] sm:$0xff]   ;;  %v1981_v31 = vld [vmem:[%s2459_s10 + $0x28] sm:$0xff]   ;;  %s2849_s22 = scalar_lea.hbm %s2905_s6, %s2063_s18  ;;  %s2858_s5 = scalar_lea.sflag [#allocation8], %s222_s13 }
  0x20   : > { %v329_v19 = vunpack.c.l.bf16 %v1975_v13  ;;  %v351_v20 = vunpack.c.h.bf16 %v1975_v13  ;;  %v373_v23 = vunpack.c.l.bf16 %v1977_v16  ;;  %v395_v24 = vunpack.c.h.bf16 %v1977_v16  ;;  %v1983_v32 = vld [vmem:[%s2459_s10 + $0x30] sm:$0xff]   ;;  %v1985_v37 = vld [vmem:[%s2459_s10 + $0x38] sm:$0xff]   ;;  %v1987_v51 = vld [vmem:[%s2459_s10 + $0x40] sm:$0xff]   ;;  %s2276_s27 = scalar_lea.vmem %s2851_s19, 4096  ;;  %s2342_s29 = smov [#allocation7]  }
  0x21   : > { %v248_v21 = vsel %vm247_vm0, %v242_v14, %v2383_v1  ;;  %v269_v22 = vsel %vm247_vm0, %v263_v15, %v2383_v1  ;;  %v291_v28 = vsel %vm247_vm0, %v285_v17, %v2383_v1  ;;  %v313_v29 = vsel %vm247_vm0, %v307_v18, %v2383_v1  ;;  %v1989_v57 = vld [vmem:[%s2459_s10 + $0x48] sm:$0xff]   ;;  %v1991_v58 = vld [vmem:[%s2459_s10 + $0x50] sm:$0xff]   ;;  %v1993_v0 = vld [vmem:[%s2459_s10 + $0x58] sm:$0xff]   ;;  %p2277_p11 = scmp.ne.s32.totalorder %s2851_s19, %s2276_s27  ;;  %s2280_s30 = sshll.u32 %s2342_s29, 4  ;;  %s2281_s30 = int_to_ptr.vmem [resolvable:$false] %s2280_s30 }
  0x22   : > { %1149 = vmatpush1.bf16.msra.mxu0 %v2243_v10  ;;  %v249_v26 = vpack.c.bf16 %v2341_v25, %v248_v21  ;;  %v271_v27 = vpack.c.bf16 %v2341_v25, %v269_v22  ;;  %v293_v33 = vpack.c.bf16 %v2341_v25, %v291_v28  ;;  %v315_v34 = vpack.c.bf16 %v2341_v25, %v313_v29  ;;  %v2545_v9 = vld [vmem:[%s2901_s2 + $0x8] sm:$0xff]   ;;  %v2559_v14 = vld [vmem:[%s2901_s2 + $0x50] sm:$0xff]   ;;  %p2283_p0 = scmp.lt.s32.totalorder %s2851_s19, %s2281_s30 }
  0x23   : > { %v335_v35 = vsel %vm247_vm0, %v329_v19, %v2383_v1  ;;  %v357_v36 = vsel %vm247_vm0, %v351_v20, %v2383_v1  ;;  %v379_v40 = vsel %vm247_vm0, %v373_v23, %v2383_v1  ;;  %v401_v41 = vsel %vm247_vm0, %v395_v24, %v2383_v1  ;;  %2064 = vmatprep.subr.bf16.mxu0 %v2260_v46  ;;  %v1995_v24 = vld [vmem:[%s2459_s10 + $0x60] sm:$0xff]   ;;  %p2278_p12 = pnand %p2277_p11, %p2423_p5 }
  0x24   : > { %251 = vst [vmem:[#allocation9] sm:$0xf] %v249_v26  ;;  %273 = vst [vmem:[#allocation9 + $0x4] sm:$0xf] %v271_v27  ;;  %v337_v38 = vpack.c.bf16 %v2341_v25, %v335_v35  ;;  %v359_v39 = vpack.c.bf16 %v2341_v25, %v357_v36  ;;  %v381_v42 = vpack.c.bf16 %v2341_v25, %v379_v40  ;;  %v417_v44 = vunpack.c.l.bf16 %v1979_v30  ;;  %v2001_v36 = vld [vmem:[%s2459_s10 + $0x78] sm:$0xff]  }
  0x25   : > { %295 = vst [vmem:[#allocation9 + $0x8] sm:$0xf] %v293_v33  ;;  %317 = vst [vmem:[#allocation9 + $0xc] sm:$0xf] %v315_v34  ;;  %v403_v43 = vpack.c.bf16 %v2341_v25, %v401_v41  ;;  %v439_v45 = vunpack.c.h.bf16 %v1979_v30  ;;  %v461_v47 = vunpack.c.l.bf16 %v1981_v31  ;;  %v483_v48 = vunpack.c.h.bf16 %v1981_v31  ;;  %2185 = vmatpush3.bf16.msra.mxu1 %v2545_v9  ;;  %v1997_v30 = vld [vmem:[%s2459_s10 + $0x68] sm:$0xff]   ;;  %v1999_v31 = vld [vmem:[%s2459_s10 + $0x70] sm:$0xff]   ;;  %p2279_p13 = pneg %p2278_p12 }
  0x26   : > { %339 = vst [vmem:[#allocation9 + $0x10] sm:$0xf] %v337_v38  ;;  %361 = vst [vmem:[#allocation9 + $0x14] sm:$0xf] %v359_v39  ;;  %v505_v49 = vunpack.c.l.bf16 %v1983_v32  ;;  %v527_v50 = vunpack.c.h.bf16 %v1983_v32  ;;  %v423_v53 = vsel %vm247_vm0, %v417_v44, %v2383_v1  ;;  %v549_v55 = vunpack.c.l.bf16 %v1985_v37  ;;  %2178 = vmatprep.subr.bf16.mxu1 %v2559_v14  ;;  %s2282_s10 = scalar_lea.vmem %s2281_s30, 8192 }
  0x27   : > { %383 = vst [vmem:[#allocation9 + $0x18] sm:$0xf] %v381_v42  ;;  %405 = vst [vmem:[#allocation9 + $0x1c] sm:$0xf] %v403_v43  ;;  %v445_v54 = vsel %vm247_vm0, %v439_v45, %v2383_v1  ;;  %v571_v56 = vunpack.c.h.bf16 %v1985_v37  ;;  %v425_v60 = vpack.c.bf16 %v2341_v25, %v423_v53  ;;  %v467_v62 = vsel %vm247_vm0, %v461_v47, %v2383_v1  ;;  %v2265_v37 = vld [vmem:[%s2901_s2 + $0x10] sm:$0xff]   ;;  %v2266_v42 = vld [vmem:[%s2901_s2 + $0x58] sm:$0xff]   ;;  %p2284_p1 = scmp.lt.s32.totalorder %s2282_s10, %s2276_s27 }
  0x28   : > { %v447_v61 = vpack.c.bf16 %v2341_v25, %v445_v54  ;;  %v489_v63 = vsel %vm247_vm0, %v483_v48, %v2383_v1  ;;  %v469_v2 = vpack.c.bf16 %v2341_v25, %v467_v62  ;;  %v511_v6 = vsel %vm247_vm0, %v505_v49, %v2383_v1 }
  0x29   : > { %v491_v4 = vpack.c.bf16 %v2341_v25, %v489_v63  ;;  %v533_v7 = vsel %vm247_vm0, %v527_v50, %v2383_v1  ;;  %427 = vst [vmem:[#allocation9 + $0x20] sm:$0xf] %v425_v60  ;;  %v513_v10 = vpack.c.bf16 %v2341_v25, %v511_v6  ;;  %v555_v12 = vsel %vm247_vm0, %v549_v55, %v2383_v1  ;;  %v2267_v60 = vld [vmem:[%s2901_s2 + $0x18] sm:$0xff]   ;;  %p2285_p2 = por %p2284_p1, %p2283_p0 }
  0x2a   : > { %449 = vst [vmem:[#allocation9 + $0x24] sm:$0xf] %v447_v61  ;;  %v535_v11 = vpack.c.bf16 %v2341_v25, %v533_v7  ;;  %v577_v13 = vsel %vm247_vm0, %v571_v56, %v2383_v1  ;;  %471 = vst [vmem:[#allocation9 + $0x28] sm:$0xf] %v469_v2  ;;  %v557_v16 = vpack.c.bf16 %v2341_v25, %v555_v12  ;;  %v593_v18 = vunpack.c.l.bf16 %v1987_v51  ;;  %v2268_v2 = vld [vmem:[%s2901_s2 + $0x60] sm:$0xff]  }
  0x2b   : > { %v2244_v15 = vld [vmem:[#allocation9] sm:$0xff]   ;;  %493 = vst [vmem:[#allocation9 + $0x2c] sm:$0xf] %v491_v4  ;;  %v579_v17 = vpack.c.bf16 %v2341_v25, %v577_v13  ;;  %v615_v19 = vunpack.c.h.bf16 %v1987_v51  ;;  %515 = vst [vmem:[#allocation9 + $0x30] sm:$0xf] %v513_v10  ;;  %v637_v20 = vunpack.c.l.bf16 %v1989_v57  ;;  %v659_v21 = vunpack.c.h.bf16 %v1989_v57  ;;  %2186 = vmatpush3.bf16.msra.mxu1 %v2265_v37  ;;  %p2286_p3 = pnand %p2285_p2, %p2279_p13 }
  0x2c   : > { %537 = vst [vmem:[#allocation9 + $0x34] sm:$0xf] %v535_v11  ;;  %v681_v22 = vunpack.c.l.bf16 %v1991_v58  ;;  %v703_v23 = vunpack.c.h.bf16 %v1991_v58  ;;  %2025 = vmatmul.mubr.msk.bf16.vlgmr.msra.gmra.mrb[0].mxu0 %vm1095_vm1, %v2244_v15  ;;  %559 = vst [vmem:[#allocation9 + $0x38] sm:$0xf] %v557_v16  ;;  %v599_v26 = vsel %vm247_vm0, %v593_v18, %v2383_v1  ;;  %v725_v28 = vunpack.c.l.bf16 %v1993_v0  ;;  %v2245_v47 = vld [vmem:[#allocation9 + $0x8] sm:$0xff]   ;;  %2179 = vmatprep.subr.bf16.mxu1 %v2266_v42 }
  0x2d   : > { %581 = vst [vmem:[#allocation9 + $0x3c] sm:$0xf] %v579_v17  ;;  %v621_v27 = vsel %vm247_vm0, %v615_v19, %v2383_v1  ;;  %v747_v29 = vunpack.c.h.bf16 %v1993_v0  ;;  %1186 = vmatprep.mubr.bf16.mxu0 %v2340_v5  ;;  %v601_v32 = vpack.c.bf16 %v2341_v25, %v599_v26  ;;  %v643_v34 = vsel %vm247_vm0, %v637_v20, %v2383_v1  ;;  %v2246_v16 = vld [vmem:[#allocation9 + $0x10] sm:$0xff]   ;;  %v2271_v26 = vld [vmem:[%s2901_s2 + $0x28] sm:$0xff]  }
  0x2e   : > { %v623_v33 = vpack.c.bf16 %v2341_v25, %v621_v27  ;;  %v665_v35 = vsel %vm247_vm0, %v659_v21, %v2383_v1  ;;  %v645_v38 = vpack.c.bf16 %v2341_v25, %v643_v34  ;;  %v687_v40 = vsel %vm247_vm0, %v681_v22, %v2383_v1  ;;  %2065 = vmatpush3.bf16.msra.mxu0 %v2509_v52 }
  0x2f   : > { %v667_v39 = vpack.c.bf16 %v2341_v25, %v665_v35  ;;  %v709_v41 = vsel %vm247_vm0, %v703_v23, %v2383_v1  ;;  %603 = vst [vmem:[#allocation9 + $0x40] sm:$0xf] %v601_v32  ;;  %v689_v43 = vpack.c.bf16 %v2341_v25, %v687_v40  ;;  %v731_v45 = vsel %vm247_vm0, %v725_v28, %v2383_v1  ;;  %v2272_v28 = vld [vmem:[%s2901_s2 + $0x70] sm:$0xff]  }
  0x30   : > { %625 = vst [vmem:[#allocation9 + $0x44] sm:$0xf] %v623_v33  ;;  %v711_v44 = vpack.c.bf16 %v2341_v25, %v709_v41  ;;  %v753_v46 = vsel %vm247_vm0, %v747_v29, %v2383_v1  ;;  %2066 = vmatprep.subr.bf16.mxu0 %v2522_v59  ;;  %647 = vst [vmem:[#allocation9 + $0x48] sm:$0xf] %v645_v38  ;;  %v733_v48 = vpack.c.bf16 %v2341_v25, %v731_v45  ;;  %v2273_v29 = vld [vmem:[%s2901_s2 + $0x30] sm:$0xff]  }
  0x31   : > { %669 = vst [vmem:[#allocation9 + $0x4c] sm:$0xf] %v667_v39  ;;  %v755_v49 = vpack.c.bf16 %v2341_v25, %v753_v46  ;;  %v769_v50 = vunpack.c.l.bf16 %v1995_v24  ;;  %v791_v51 = vunpack.c.h.bf16 %v1995_v24  ;;  %691 = vst [vmem:[#allocation9 + $0x50] sm:$0xf] %v689_v43  ;;  %v813_v52 = vunpack.c.l.bf16 %v1997_v30  ;;  %2187 = vmatpush3.bf16.msra.mxu1 %v2267_v60  ;;  %v2248_v17 = vld [vmem:[#allocation9 + $0x20] sm:$0xff]   ;;  %v2270_v24 = vld [vmem:[%s2901_s2 + $0x68] sm:$0xff]  }
  0x32   : > { %713 = vst [vmem:[#allocation9 + $0x54] sm:$0xf] %v711_v44  ;;  %v835_v53 = vunpack.c.h.bf16 %v1997_v30  ;;  %v857_v54 = vunpack.c.l.bf16 %v1999_v31  ;;  %v879_v55 = vunpack.c.h.bf16 %v1999_v31  ;;  %735 = vst [vmem:[#allocation9 + $0x58] sm:$0xf] %v733_v48  ;;  %v901_v58 = vunpack.c.l.bf16 %v2001_v36  ;;  %2067 = vmatpush3.bf16.msra.mxu0 %v2545_v9  ;;  %2180 = vmatprep.subr.bf16.mxu1 %v2268_v2  ;;  %v2249_v18 = vld [vmem:[#allocation9 + $0x28] sm:$0xff]   ;;  %v2274_v30 = vld [vmem:[%s2901_s2 + $0x78] sm:$0xff]  }
  0x33   : > { %757 = vst [vmem:[#allocation9 + $0x5c] sm:$0xf] %v755_v49  ;;  %v775_v56 = vsel %vm247_vm0, %v769_v50, %v2383_v1  ;;  %v797_v57 = vsel %vm247_vm0, %v791_v51, %v2383_v1  ;;  %v923_v59 = vunpack.c.h.bf16 %v2001_v36  ;;  %v819_v63 = vsel %vm247_vm0, %v813_v52, %v2383_v1  ;;  %2068 = vmatprep.subr.bf16.mxu0 %v2559_v14  ;;  %v2250_v19 = vld [vmem:[#allocation9 + $0x30] sm:$0xff]   ;;  %v2275_v31 = vld [vmem:[%s2901_s2 + $0x38] sm:$0xff]   ;;  %v973_v38 = vld [vmem:[%s2900_s1] sm:$0x3] }
  0x34   : > { %v777_v61 = vpack.c.bf16 %v2341_v25, %v775_v56  ;;  %v799_v62 = vpack.c.bf16 %v2341_v25, %v797_v57  ;;  %v841_v0 = vsel %vm247_vm0, %v835_v53, %v2383_v1  ;;  %2026 = vmatmul.mubr.msk.bf16.gmra.mrb[4].mxu0 %vm1095_vm1, %v2245_v47  ;;  %v821_v4 = vpack.c.bf16 %v2341_v25, %v819_v63  ;;  %v2251_v20 = vld [vmem:[#allocation9 + $0x38] sm:$0xff]  }
  0x35   : > { %v843_v6 = vpack.c.bf16 %v2341_v25, %v841_v0  ;;  %v863_v7 = vsel %vm247_vm0, %v857_v54, %v2383_v1  ;;  %v885_v9 = vsel %vm247_vm0, %v879_v55, %v2383_v1  ;;  %1196 = vmatprep.mubr.bf16.mxu0 %v2340_v5  ;;  %v907_v12 = vsel %vm247_vm0, %v901_v58, %v2383_v1 }
  0x36   : > { %779 = vst [vmem:[#allocation9 + $0x60] sm:$0xf] %v777_v61  ;;  %801 = vst [vmem:[#allocation9 + $0x64] sm:$0xf] %v799_v62  ;;  %v865_v10 = vpack.c.bf16 %v2341_v25, %v863_v7  ;;  %v887_v11 = vpack.c.bf16 %v2341_v25, %v885_v9  ;;  %v929_v13 = vsel %vm247_vm0, %v923_v59, %v2383_v1  ;;  %2069 = vmatpush3.bf16.msra.mxu0 %v2265_v37 }
  0x37   : > { %823 = vst [vmem:[#allocation9 + $0x68] sm:$0xf] %v821_v4  ;;  %845 = vst [vmem:[#allocation9 + $0x6c] sm:$0xf] %v843_v6  ;;  %v909_v14 = vpack.c.bf16 %v2341_v25, %v907_v12  ;;  %v931_v15 = vpack.c.bf16 %v2341_v25, %v929_v13  ;;  %2070 = vmatprep.subr.bf16.mxu0 %v2266_v42  ;;  %2188 = vmatpush3.bf16.msra.mxu1 %v2269_v8  ;;  %v2247_v25 = vld [vmem:[#allocation9 + $0x18] sm:$0xff]   ;;  %v2252_v21 = vld [vmem:[#allocation9 + $0x40] sm:$0xff]  }
  0x38   : > { %867 = vst [vmem:[#allocation9 + $0x70] sm:$0xf] %v865_v10  ;;  %889 = vst [vmem:[#allocation9 + $0x74] sm:$0xf] %v887_v11  ;;  %v2253_v22 = vld [vmem:[#allocation9 + $0x48] sm:$0xff]   ;;  %2181 = vmatprep.subr.bf16.mxu1 %v2270_v24  ;;  %v976_v36 = vshrl.u32 %v244_v3, 7 }
  0x39   : > { %911 = vst [vmem:[#allocation9 + $0x78] sm:$0xf] %v909_v14  ;;  %933 = vst [vmem:[#allocation9 + $0x7c] sm:$0xf] %v931_v15  ;;  %v2254_v23 = vld [vmem:[#allocation9 + $0x50] sm:$0xff]  }
  0x3a   : > { %2071 = vmatpush3.bf16.msra.mxu0 %v2267_v60  ;;  %v2255_v27 = vld [vmem:[#allocation9 + $0x58] sm:$0xff]   ;;  %v977_v37 = vsub.s32 0, %v976_v36  ;;  %v981_v39 = vsub.s32 1, %v976_v36 }
  0x3b   : > { %2072 = vmatprep.subr.bf16.mxu0 %v2268_v2  ;;  %2189 = vmatpush3.bf16.msra.mxu1 %v2271_v26 }
  0x3c   : > { %2027 = vmatmul.mubr.msk.bf16.gmra.mrb[8].mxu0 %vm1095_vm1, %v2246_v16  ;;  %2182 = vmatprep.subr.bf16.mxu1 %v2272_v28  ;;  %v2705_v40 = vrot.slane %v973_v38, %v977_v37  ;;  %v2707_v41 = vrot.slane %v973_v38, %v981_v39 }
  0x3d   : > { %1206 = vmatprep.mubr.bf16.mxu0 %v2340_v5  ;;  %v2256_v32 = vld [vmem:[#allocation9 + $0x60] sm:$0xff]  }
  0x3e   : > { %2073 = vmatpush3.bf16.msra.mxu0 %v2269_v8  ;;  %v2257_v33 = vld [vmem:[#allocation9 + $0x68] sm:$0xff]  }
  0x3f   : > { %2074 = vmatprep.subr.bf16.mxu0 %v2270_v24  ;;  %2190 = vmatpush3.bf16.msra.mxu1 %v2273_v29  ;;  %v2258_v34 = vld [vmem:[#allocation9 + $0x70] sm:$0xff]  }
  0x40   : > { %2183 = vmatprep.subr.bf16.mxu1 %v2274_v30  ;;  %v2259_v35 = vld [vmem:[#allocation9 + $0x78] sm:$0xff]  }
  0x42   : > { %2075 = vmatpush3.bf16.msra.mxu0 %v2271_v26 }
  0x43   : > { %2076 = vmatprep.subr.bf16.mxu0 %v2272_v28  ;;  %2191 = vmatpush3.bf16.msra.mxu1 %v2275_v31 }
  0x44   : > { %2028 = vmatmul.mubr.msk.bf16.gmra.mrb[12].mxu0 %vm1095_vm1, %v2247_v25 }
  0x45   : > { %1216 = vmatprep.mubr.bf16.mxu0 %v2340_v5 }
  0x46   : > { %2077 = vmatpush3.bf16.msra.mxu0 %v2273_v29 }
  0x47   : > { %2078 = vmatprep.subr.bf16.mxu0 %v2274_v30 }
  0x4a   : > { %2079 = vmatpush3.bf16.msra.mxu0 %v2275_v31 }
  0x4c   : > { %2029 = vmatmul.mubr.msk.bf16.gmra.mrb[16].mxu0 %vm1095_vm1, %v2248_v17 }
  0x4d   : > { %1226 = vmatprep.mubr.bf16.mxu0 %v2340_v5 }
  0x54   : > { %2030 = vmatmul.mubr.msk.bf16.gmra.mrb[20].mxu0 %vm1095_vm1, %v2249_v18 }
  0x55   : > { %1236 = vmatprep.mubr.bf16.mxu0 %v2340_v5 }
  0x5c   : > { %2031 = vmatmul.mubr.msk.bf16.gmra.mrb[24].mxu0 %vm1095_vm1, %v2250_v19 }
  0x5d   : > { %1246 = vmatprep.mubr.bf16.mxu0 %v2340_v5 }
  0x64   : > { %2032 = vmatmul.mubr.msk.bf16.gmra.mrb[28].mxu0 %vm1095_vm1, %v2251_v20 }
  0x65   : > { %1256 = vmatprep.mubr.bf16.mxu0 %v2340_v5 }
  0x6c   : > { %2033 = vmatmul.mubr.msk.bf16.gmra.mrb[32].mxu0 %vm1095_vm1, %v2252_v21 }
  0x6d   : > { %1266 = vmatprep.mubr.bf16.mxu0 %v2340_v5 }
  0x74   : > { %2034 = vmatmul.mubr.msk.bf16.gmra.mrb[36].mxu0 %vm1095_vm1, %v2253_v22 }
  0x75   : > { %1276 = vmatprep.mubr.bf16.mxu0 %v2340_v5 }
  0x7c   : > { %2035 = vmatmul.mubr.msk.bf16.gmra.mrb[40].mxu0 %vm1095_vm1, %v2254_v23 }
  0x7d   : > { %1286 = vmatprep.mubr.bf16.mxu0 %v2340_v5 }
  0x84   : > { %2036 = vmatmul.mubr.msk.bf16.gmra.mrb[44].mxu0 %vm1095_vm1, %v2255_v27 }
  0x85   : > { %1296 = vmatprep.mubr.bf16.mxu0 %v2340_v5 }
  0x8c   : > { %2037 = vmatmul.mubr.msk.bf16.gmra.mrb[48].mxu0 %vm1095_vm1, %v2256_v32 }
  0x8d   : > { %1306 = vmatprep.mubr.bf16.mxu0 %v2340_v5 }
  0x94   : > { %2038 = vmatmul.mubr.msk.bf16.gmra.mrb[52].mxu0 %vm1095_vm1, %v2257_v33 }
  0x95   : > { %1316 = vmatprep.mubr.bf16.mxu0 %v2340_v5 }
  0x9c   : > { %2039 = vmatmul.mubr.msk.bf16.gmra.mrb[56].mxu0 %vm1095_vm1, %v2258_v34 }
  0x9d   : > { %1326 = vmatprep.mubr.bf16.mxu0 %v2340_v5 }
  0xa4   : > { %2040 = vmatmul.mubr.msk.bf16.gmra.mrb[60].mxu0 %vm1095_vm1, %v2259_v35 }
  0xff   : > { %v1178_v42 = vpop.f32.mrb[0].mxu0 }
 0x100   : > { %v1179_v43 = vadd.f32 %v1178_v42, %v2705_v40  ;;  %v1180_v44 = vpop.f32.mrb[1].mxu0 }
 0x101   : > { %v1181_v5 = vadd.f32 %v1180_v44, %v2707_v41  ;;  %v1182_v45 = vpop.f32.mrb[2].mxu0 }
 0x102   : > { %v1401_v46 = vmul.f32 0.01, %v1179_v43  ;;  %v1183_v3 = vadd.f32 %v1182_v45, %v2705_v40  ;;  %v1184_v47 = vpop.f32.mrb[3].mxu0  ;;  %vm1337_vm2 = vcmp.ge.f32.partialorder %v1179_v43, 0.0 }
 0x103   : > { %v1402_v48 = vmul.f32 0.01, %v1181_v5  ;;  %v1185_v49 = vadd.f32 %v1184_v47, %v2707_v41  ;;  %vm1338_vm3 = vcmp.ge.f32.partialorder %v1181_v5, 0.0 }
 0x104   : > { %vm1339_vm4 = vcmp.ge.f32.partialorder %v1183_v3, 0.0  ;;  %v1403_v50 = vmul.f32 0.01, %v1183_v3  ;;  %v1465_v52 = vsel %vm1337_vm2, %v1179_v43, %v1401_v46 }
 0x105   : > { %vm1340_vm5 = vcmp.ge.f32.partialorder %v1185_v49, 0.0  ;;  %v1404_v51 = vmul.f32 0.01, %v1185_v49  ;;  %v1466_v56 = vsel %vm1338_vm3, %v1181_v5, %v1402_v48 }
 0x106   : > { %v1467_v53 = vsel %vm1339_vm4, %v1183_v3, %v1403_v50 }
 0x107   : > { %v1529_v54 = vpack.c.bf16 %v1467_v53, %v1465_v52  ;;  %v1188_v55 = vpop.f32.mrb[4].mxu0  ;;  %v1468_v57 = vsel %vm1340_vm5, %v1185_v49, %v1404_v51 }
 0x108   : > { %v1189_v58 = vadd.f32 %v1188_v55, %v2705_v40  ;;  %v1190_v59 = vpop.f32.mrb[5].mxu0  ;;  %v1530_v60 = vpack.c.bf16 %v1468_v57, %v1466_v56 }
 0x109   : > { %v1191_v61 = vadd.f32 %v1190_v59, %v2707_v41  ;;  %v1192_v62 = vpop.f32.mrb[6].mxu0 }
 0x10a   : > { %v1405_v63 = vmul.f32 0.01, %v1189_v58  ;;  %v1193_v0 = vadd.f32 %v1192_v62, %v2705_v40  ;;  %v1194_v2 = vpop.f32.mrb[7].mxu0  ;;  %1728 = vmatprep.mubr.bf16.mxu0 %v1530_v60  ;;  %vm1341_vm6 = vcmp.ge.f32.partialorder %v1189_v58, 0.0 }
 0x10b   : > { %v1406_v4 = vmul.f32 0.01, %v1191_v61  ;;  %v1195_v6 = vadd.f32 %v1194_v2, %v2707_v41  ;;  %1729 = vmatmul.mubr.bf16.vlgmr.msra.gmra.mrb[64].mxu0 %v1529_v54  ;;  %vm1342_vm8 = vcmp.ge.f32.partialorder %v1191_v61, 0.0 }
 0x10c   : > { %vm1343_vm7 = vcmp.ge.f32.partialorder %v1193_v0, 0.0  ;;  %v1407_v7 = vmul.f32 0.01, %v1193_v0  ;;  %v1469_v10 = vsel %vm1341_vm6, %v1189_v58, %v1405_v63 }
 0x10d   : > { %v1408_v9 = vmul.f32 0.01, %v1195_v6  ;;  %vm1344_vm9 = vcmp.ge.f32.partialorder %v1195_v6, 0.0  ;;  %v1470_v13 = vsel %vm1342_vm8, %v1191_v61, %v1406_v4 }
 0x10e   : > { %v1471_v11 = vsel %vm1343_vm7, %v1193_v0, %v1407_v7 }
 0x10f   : > { %v1198_v12 = vpop.f32.mrb[8].mxu0  ;;  %v1472_v14 = vsel %vm1344_vm9, %v1195_v6, %v1408_v9  ;;  %v1531_v15 = vpack.c.bf16 %v1471_v11, %v1469_v10 }
 0x110   : > { %v1199_v16 = vadd.f32 %v1198_v12, %v2705_v40  ;;  %v1200_v8 = vpop.f32.mrb[9].mxu0  ;;  %v1532_v25 = vpack.c.bf16 %v1472_v14, %v1470_v13 }
 0x111   : > { %v1201_v17 = vadd.f32 %v1200_v8, %v2707_v41  ;;  %v1202_v18 = vpop.f32.mrb[10].mxu0 }
 0x112   : > { %v1409_v19 = vmul.f32 0.01, %v1199_v16  ;;  %v1203_v20 = vadd.f32 %v1202_v18, %v2705_v40  ;;  %v1204_v21 = vpop.f32.mrb[11].mxu0  ;;  %1736 = vmatprep.mubr.bf16.mxu1 %v1532_v25  ;;  %vm1345_vm10 = vcmp.ge.f32.partialorder %v1199_v16, 0.0 }
 0x113   : > { %v1410_v22 = vmul.f32 0.01, %v1201_v17  ;;  %v1205_v23 = vadd.f32 %v1204_v21, %v2707_v41  ;;  %1737 = vmatmul.mubr.bf16.vlgmr.msra.gmra.mrb[0].mxu1 %v1531_v15  ;;  %vm1346_vm11 = vcmp.ge.f32.partialorder %v1201_v17, 0.0 }
 0x114   : > { %vm1347_vm12 = vcmp.ge.f32.partialorder %v1203_v20, 0.0  ;;  %v1411_v24 = vmul.f32 0.01, %v1203_v20  ;;  %v1473_v27 = vsel %vm1345_vm10, %v1199_v16, %v1409_v19 }
 0x115   : > { %vm1348_vm13 = vcmp.ge.f32.partialorder %v1205_v23, 0.0  ;;  %v1412_v26 = vmul.f32 0.01, %v1205_v23  ;;  %v1474_v30 = vsel %vm1346_vm11, %v1201_v17, %v1410_v22 }
 0x116   : > { %v1475_v28 = vsel %vm1347_vm12, %v1203_v20, %v1411_v24 }
 0x117   : > { %v1208_v29 = vpop.f32.mrb[12].mxu0  ;;  %v1476_v31 = vsel %vm1348_vm13, %v1205_v23, %v1412_v26  ;;  %v1533_v32 = vpack.c.bf16 %v1475_v28, %v1473_v27 }
 0x118   : > { %v1209_v33 = vadd.f32 %v1208_v29, %v2705_v40  ;;  %v1210_v34 = vpop.f32.mrb[13].mxu0  ;;  %v1534_v35 = vpack.c.bf16 %v1476_v31, %v1474_v30 }
 0x119   : > { %v1211_v36 = vadd.f32 %v1210_v34, %v2707_v41  ;;  %v1212_v37 = vpop.f32.mrb[14].mxu0 }
 0x11a   : > { %v1413_v38 = vmul.f32 0.01, %v1209_v33  ;;  %v1213_v39 = vadd.f32 %v1212_v37, %v2705_v40  ;;  %v1214_v42 = vpop.f32.mrb[15].mxu0  ;;  %1744 = vmatprep.mubr.bf16.mxu1 %v1534_v35  ;;  %vm1349_vm14 = vcmp.ge.f32.partialorder %v1209_v33, 0.0 }
 0x11b   : > { %v1414_v43 = vmul.f32 0.01, %v1211_v36  ;;  %v1215_v44 = vadd.f32 %v1214_v42, %v2707_v41  ;;  %1745 = vmatmul.mubr.bf16.gmra.mrb[4].mxu1 %v1533_v32  ;;  %vm1350_vm15 = vcmp.ge.f32.partialorder %v1211_v36, 0.0 }
 0x11c   : > { %vm1351_vm0 = vcmp.ge.f32.partialorder %v1213_v39, 0.0  ;;  %v1415_v5 = vmul.f32 0.01, %v1213_v39  ;;  %v1477_v46 = vsel %vm1349_vm14, %v1209_v33, %v1413_v38 }
 0x11d   : > { %vm1352_vm1 = vcmp.ge.f32.partialorder %v1215_v44, 0.0  ;;  %v1416_v45 = vmul.f32 0.01, %v1215_v44  ;;  %v1478_v48 = vsel %vm1350_vm15, %v1211_v36, %v1414_v43 }
 0x11e   : > { %v1479_v3 = vsel %vm1351_vm0, %v1213_v39, %v1415_v5 }
 0x11f   : > { %v1218_v47 = vpop.f32.mrb[16].mxu0  ;;  %v1480_v49 = vsel %vm1352_vm1, %v1215_v44, %v1416_v45  ;;  %v1535_v50 = vpack.c.bf16 %v1479_v3, %v1477_v46 }
 0x120   : > { %v1219_v51 = vadd.f32 %v1218_v47, %v2705_v40  ;;  %v1220_v52 = vpop.f32.mrb[17].mxu0  ;;  %v1536_v53 = vpack.c.bf16 %v1480_v49, %v1478_v48 }
 0x121   : > { %v1221_v54 = vadd.f32 %v1220_v52, %v2707_v41  ;;  %v1222_v55 = vpop.f32.mrb[18].mxu0 }
 0x122   : > { %v1417_v56 = vmul.f32 0.01, %v1219_v51  ;;  %v1223_v57 = vadd.f32 %v1222_v55, %v2705_v40  ;;  %v1224_v58 = vpop.f32.mrb[19].mxu0  ;;  %1752 = vmatprep.mubr.bf16.mxu1 %v1536_v53  ;;  %vm1353_vm2 = vcmp.ge.f32.partialorder %v1219_v51, 0.0 }
 0x123   : > { %v1418_v59 = vmul.f32 0.01, %v1221_v54  ;;  %v1225_v60 = vadd.f32 %v1224_v58, %v2707_v41  ;;  %1753 = vmatmul.mubr.bf16.gmra.mrb[8].mxu1 %v1535_v50  ;;  %vm1354_vm3 = vcmp.ge.f32.partialorder %v1221_v54, 0.0 }
 0x124   : > { %vm1355_vm4 = vcmp.ge.f32.partialorder %v1223_v57, 0.0  ;;  %v1419_v61 = vmul.f32 0.01, %v1223_v57  ;;  %v1481_v63 = vsel %vm1353_vm2, %v1219_v51, %v1417_v56 }
 0x125   : > { %vm1356_vm5 = vcmp.ge.f32.partialorder %v1225_v60, 0.0  ;;  %v1420_v62 = vmul.f32 0.01, %v1225_v60  ;;  %v1482_v4 = vsel %vm1354_vm3, %v1221_v54, %v1418_v59 }
 0x126   : > { %v1483_v0 = vsel %vm1355_vm4, %v1223_v57, %v1419_v61 }
 0x127   : > { %v1228_v2 = vpop.f32.mrb[20].mxu0  ;;  %v1484_v6 = vsel %vm1356_vm5, %v1225_v60, %v1420_v62  ;;  %v1537_v7 = vpack.c.bf16 %v1483_v0, %v1481_v63 }
 0x128   : > { %v1229_v9 = vadd.f32 %v1228_v2, %v2705_v40  ;;  %v1230_v10 = vpop.f32.mrb[21].mxu0  ;;  %v1538_v11 = vpack.c.bf16 %v1484_v6, %v1482_v4 }
 0x129   : > { %v1231_v12 = vadd.f32 %v1230_v10, %v2707_v41  ;;  %v1232_v13 = vpop.f32.mrb[22].mxu0 }
 0x12a   : > { %v1421_v14 = vmul.f32 0.01, %v1229_v9  ;;  %v1233_v15 = vadd.f32 %v1232_v13, %v2705_v40  ;;  %v1234_v16 = vpop.f32.mrb[23].mxu0  ;;  %1760 = vmatprep.mubr.bf16.mxu1 %v1538_v11  ;;  %vm1357_vm6 = vcmp.ge.f32.partialorder %v1229_v9, 0.0 }
 0x12b   : > { %v1422_v8 = vmul.f32 0.01, %v1231_v12  ;;  %v1235_v25 = vadd.f32 %v1234_v16, %v2707_v41  ;;  %1761 = vmatmul.mubr.bf16.gmra.mrb[12].mxu1 %v1537_v7  ;;  %vm1358_vm7 = vcmp.ge.f32.partialorder %v1231_v12, 0.0 }
 0x12c   : > { %vm1359_vm8 = vcmp.ge.f32.partialorder %v1233_v15, 0.0  ;;  %v1423_v17 = vmul.f32 0.01, %v1233_v15  ;;  %v1485_v19 = vsel %vm1357_vm6, %v1229_v9, %v1421_v14 }
 0x12d   : > { %vm1360_vm9 = vcmp.ge.f32.partialorder %v1235_v25, 0.0  ;;  %v1424_v18 = vmul.f32 0.01, %v1235_v25  ;;  %v1486_v22 = vsel %vm1358_vm7, %v1231_v12, %v1422_v8 }
 0x12e   : > { %v1487_v20 = vsel %vm1359_vm8, %v1233_v15, %v1423_v17 }
 0x12f   : > { %v1238_v21 = vpop.f32.mrb[24].mxu0  ;;  %v1488_v23 = vsel %vm1360_vm9, %v1235_v25, %v1424_v18  ;;  %v1539_v24 = vpack.c.bf16 %v1487_v20, %v1485_v19 }
 0x130   : > { %v1239_v26 = vadd.f32 %v1238_v21, %v2705_v40  ;;  %v1240_v27 = vpop.f32.mrb[25].mxu0  ;;  %v1540_v28 = vpack.c.bf16 %v1488_v23, %v1486_v22 }
 0x131   : > { %v1241_v29 = vadd.f32 %v1240_v27, %v2707_v41  ;;  %v1242_v30 = vpop.f32.mrb[26].mxu0 }
 0x132   : > { %v1425_v31 = vmul.f32 0.01, %v1239_v26  ;;  %v1243_v32 = vadd.f32 %v1242_v30, %v2705_v40  ;;  %v1244_v33 = vpop.f32.mrb[27].mxu0  ;;  %1768 = vmatprep.mubr.bf16.mxu1 %v1540_v28  ;;  %vm1361_vm10 = vcmp.ge.f32.partialorder %v1239_v26, 0.0 }
 0x133   : > { %v1426_v34 = vmul.f32 0.01, %v1241_v29  ;;  %v1245_v35 = vadd.f32 %v1244_v33, %v2707_v41  ;;  %1769 = vmatmul.mubr.bf16.gmra.mrb[16].mxu1 %v1539_v24  ;;  %vm1362_vm11 = vcmp.ge.f32.partialorder %v1241_v29, 0.0 }
 0x134   : > { %vm1363_vm12 = vcmp.ge.f32.partialorder %v1243_v32, 0.0  ;;  %v1427_v36 = vmul.f32 0.01, %v1243_v32  ;;  %v1489_v38 = vsel %vm1361_vm10, %v1239_v26, %v1425_v31 }
 0x135   : > { %vm1364_vm13 = vcmp.ge.f32.partialorder %v1245_v35, 0.0  ;;  %v1428_v37 = vmul.f32 0.01, %v1245_v35  ;;  %v1490_v43 = vsel %vm1362_vm11, %v1241_v29, %v1426_v34 }
 0x136   : > { %v1491_v39 = vsel %vm1363_vm12, %v1243_v32, %v1427_v36 }
 0x137   : > { %v1248_v42 = vpop.f32.mrb[28].mxu0  ;;  %v1492_v44 = vsel %vm1364_vm13, %v1245_v35, %v1428_v37  ;;  %v1541_v5 = vpack.c.bf16 %v1491_v39, %v1489_v38 }
 0x138   : > { %v1249_v45 = vadd.f32 %v1248_v42, %v2705_v40  ;;  %v1250_v46 = vpop.f32.mrb[29].mxu0  ;;  %v1542_v3 = vpack.c.bf16 %v1492_v44, %v1490_v43 }
 0x139   : > { %v1251_v47 = vadd.f32 %v1250_v46, %v2707_v41  ;;  %v1252_v48 = vpop.f32.mrb[30].mxu0 }
 0x13a   : > { %v1429_v49 = vmul.f32 0.01, %v1249_v45  ;;  %v1253_v50 = vadd.f32 %v1252_v48, %v2705_v40  ;;  %v1254_v51 = vpop.f32.mrb[31].mxu0  ;;  %1776 = vmatprep.mubr.bf16.mxu1 %v1542_v3  ;;  %vm1365_vm14 = vcmp.ge.f32.partialorder %v1249_v45, 0.0 }
 0x13b   : > { %v1430_v52 = vmul.f32 0.01, %v1251_v47  ;;  %v1255_v53 = vadd.f32 %v1254_v51, %v2707_v41  ;;  %1777 = vmatmul.mubr.bf16.gmra.mrb[20].mxu1 %v1541_v5  ;;  %vm1366_vm15 = vcmp.ge.f32.partialorder %v1251_v47, 0.0 }
 0x13c   : > { %vm1367_vm0 = vcmp.ge.f32.partialorder %v1253_v50, 0.0  ;;  %v1431_v54 = vmul.f32 0.01, %v1253_v50  ;;  %v1493_v56 = vsel %vm1365_vm14, %v1249_v45, %v1429_v49 }
 0x13d   : > { %vm1368_vm1 = vcmp.ge.f32.partialorder %v1255_v53, 0.0  ;;  %v1432_v55 = vmul.f32 0.01, %v1255_v53  ;;  %v1494_v59 = vsel %vm1366_vm15, %v1251_v47, %v1430_v52 }
 0x13e   : > { %v1495_v57 = vsel %vm1367_vm0, %v1253_v50, %v1431_v54 }
 0x13f   : > { %v1258_v58 = vpop.f32.mrb[32].mxu0  ;;  %v1496_v60 = vsel %vm1368_vm1, %v1255_v53, %v1432_v55  ;;  %v1543_v61 = vpack.c.bf16 %v1495_v57, %v1493_v56 }
 0x140   : > { %v1259_v62 = vadd.f32 %v1258_v58, %v2705_v40  ;;  %v1260_v63 = vpop.f32.mrb[33].mxu0  ;;  %v1544_v0 = vpack.c.bf16 %v1496_v60, %v1494_v59 }
 0x141   : > { %v1261_v2 = vadd.f32 %v1260_v63, %v2707_v41  ;;  %v1262_v4 = vpop.f32.mrb[34].mxu0 }
 0x142   : > { %v1433_v6 = vmul.f32 0.01, %v1259_v62  ;;  %v1263_v7 = vadd.f32 %v1262_v4, %v2705_v40  ;;  %v1264_v9 = vpop.f32.mrb[35].mxu0  ;;  %1784 = vmatprep.mubr.bf16.mxu1 %v1544_v0  ;;  %vm1369_vm2 = vcmp.ge.f32.partialorder %v1259_v62, 0.0 }
 0x143   : > { %v1434_v10 = vmul.f32 0.01, %v1261_v2  ;;  %v1265_v11 = vadd.f32 %v1264_v9, %v2707_v41  ;;  %1785 = vmatmul.mubr.bf16.gmra.mrb[24].mxu1 %v1543_v61  ;;  %vm1370_vm3 = vcmp.ge.f32.partialorder %v1261_v2, 0.0 }
 0x144   : > { %vm1371_vm4 = vcmp.ge.f32.partialorder %v1263_v7, 0.0  ;;  %v1435_v12 = vmul.f32 0.01, %v1263_v7  ;;  %v1497_v14 = vsel %vm1369_vm2, %v1259_v62, %v1433_v6 }
 0x145   : > { %vm1372_vm5 = vcmp.ge.f32.partialorder %v1265_v11, 0.0  ;;  %v1436_v13 = vmul.f32 0.01, %v1265_v11  ;;  %v1498_v8 = vsel %vm1370_vm3, %v1261_v2, %v1434_v10 }
 0x146   : > { %v1499_v15 = vsel %vm1371_vm4, %v1263_v7, %v1435_v12 }
 0x147   : > { %v1268_v16 = vpop.f32.mrb[36].mxu0  ;;  %v1500_v25 = vsel %vm1372_vm5, %v1265_v11, %v1436_v13  ;;  %v1545_v17 = vpack.c.bf16 %v1499_v15, %v1497_v14 }
 0x148   : > { %v1269_v18 = vadd.f32 %v1268_v16, %v2705_v40  ;;  %v1270_v19 = vpop.f32.mrb[37].mxu0  ;;  %v1546_v20 = vpack.c.bf16 %v1500_v25, %v1498_v8 }
 0x149   : > { %v1271_v21 = vadd.f32 %v1270_v19, %v2707_v41  ;;  %v1272_v22 = vpop.f32.mrb[38].mxu0 }
 0x14a   : > { %v1437_v23 = vmul.f32 0.01, %v1269_v18  ;;  %v1273_v24 = vadd.f32 %v1272_v22, %v2705_v40  ;;  %v1274_v26 = vpop.f32.mrb[39].mxu0  ;;  %1792 = vmatprep.mubr.bf16.mxu1 %v1546_v20  ;;  %vm1373_vm6 = vcmp.ge.f32.partialorder %v1269_v18, 0.0 }
 0x14b   : > { %v1438_v27 = vmul.f32 0.01, %v1271_v21  ;;  %v1275_v28 = vadd.f32 %v1274_v26, %v2707_v41  ;;  %1793 = vmatmul.mubr.bf16.gmra.mrb[28].mxu1 %v1545_v17  ;;  %vm1374_vm7 = vcmp.ge.f32.partialorder %v1271_v21, 0.0 }
 0x14c   : > { %vm1375_vm8 = vcmp.ge.f32.partialorder %v1273_v24, 0.0  ;;  %v1439_v29 = vmul.f32 0.01, %v1273_v24  ;;  %v1501_v31 = vsel %vm1373_vm6, %v1269_v18, %v1437_v23 }
 0x14d   : > { %vm1376_vm9 = vcmp.ge.f32.partialorder %v1275_v28, 0.0  ;;  %v1440_v30 = vmul.f32 0.01, %v1275_v28  ;;  %v1502_v34 = vsel %vm1374_vm7, %v1271_v21, %v1438_v27 }
 0x14e   : > { %v1503_v32 = vsel %vm1375_vm8, %v1273_v24, %v1439_v29 }
 0x14f   : > { %v1278_v33 = vpop.f32.mrb[40].mxu0  ;;  %v1504_v35 = vsel %vm1376_vm9, %v1275_v28, %v1440_v30  ;;  %v1547_v36 = vpack.c.bf16 %v1503_v32, %v1501_v31 }
 0x150   : > { %v1279_v37 = vadd.f32 %v1278_v33, %v2705_v40  ;;  %v1280_v38 = vpop.f32.mrb[41].mxu0  ;;  %v1548_v39 = vpack.c.bf16 %v1504_v35, %v1502_v34 }
 0x151   : > { %v1281_v42 = vadd.f32 %v1280_v38, %v2707_v41  ;;  %v1282_v43 = vpop.f32.mrb[42].mxu0 }
 0x152   : > { %v1441_v44 = vmul.f32 0.01, %v1279_v37  ;;  %v1283_v5 = vadd.f32 %v1282_v43, %v2705_v40  ;;  %v1284_v45 = vpop.f32.mrb[43].mxu0  ;;  %1800 = vmatprep.mubr.bf16.mxu1 %v1548_v39  ;;  %vm1377_vm10 = vcmp.ge.f32.partialorder %v1279_v37, 0.0 }
 0x153   : > { %v1442_v46 = vmul.f32 0.01, %v1281_v42  ;;  %v1285_v3 = vadd.f32 %v1284_v45, %v2707_v41  ;;  %1801 = vmatmul.mubr.bf16.gmra.mrb[32].mxu1 %v1547_v36  ;;  %vm1378_vm11 = vcmp.ge.f32.partialorder %v1281_v42, 0.0 }
 0x154   : > { %vm1379_vm12 = vcmp.ge.f32.partialorder %v1283_v5, 0.0  ;;  %v1443_v47 = vmul.f32 0.01, %v1283_v5  ;;  %v1505_v49 = vsel %vm1377_vm10, %v1279_v37, %v1441_v44 }
 0x155   : > { %vm1380_vm13 = vcmp.ge.f32.partialorder %v1285_v3, 0.0  ;;  %v1444_v48 = vmul.f32 0.01, %v1285_v3  ;;  %v1506_v52 = vsel %vm1378_vm11, %v1281_v42, %v1442_v46 }
 0x156   : > { %v1507_v50 = vsel %vm1379_vm12, %v1283_v5, %v1443_v47 }
 0x157   : > { %v1288_v51 = vpop.f32.mrb[44].mxu0  ;;  %v1508_v53 = vsel %vm1380_vm13, %v1285_v3, %v1444_v48  ;;  %v1549_v54 = vpack.c.bf16 %v1507_v50, %v1505_v49 }
 0x158   : > { %v1289_v55 = vadd.f32 %v1288_v51, %v2705_v40  ;;  %v1290_v56 = vpop.f32.mrb[45].mxu0  ;;  %v1550_v57 = vpack.c.bf16 %v1508_v53, %v1506_v52 }
 0x159   : > { %v1291_v58 = vadd.f32 %v1290_v56, %v2707_v41  ;;  %v1292_v59 = vpop.f32.mrb[46].mxu0 }
 0x15a   : > { %v1445_v60 = vmul.f32 0.01, %v1289_v55  ;;  %v1293_v61 = vadd.f32 %v1292_v59, %v2705_v40  ;;  %v1294_v62 = vpop.f32.mrb[47].mxu0  ;;  %1808 = vmatprep.mubr.bf16.mxu1 %v1550_v57  ;;  %vm1381_vm14 = vcmp.ge.f32.partialorder %v1289_v55, 0.0 }
 0x15b   : > { %v1446_v63 = vmul.f32 0.01, %v1291_v58  ;;  %v1295_v0 = vadd.f32 %v1294_v62, %v2707_v41  ;;  %1809 = vmatmul.mubr.bf16.gmra.mrb[36].mxu1 %v1549_v54  ;;  %vm1382_vm15 = vcmp.ge.f32.partialorder %v1291_v58, 0.0 }
 0x15c   : > { %vm1383_vm0 = vcmp.ge.f32.partialorder %v1293_v61, 0.0  ;;  %v1447_v2 = vmul.f32 0.01, %v1293_v61  ;;  %v1509_v6 = vsel %vm1381_vm14, %v1289_v55, %v1445_v60 }
 0x15d   : > { %vm1384_vm1 = vcmp.ge.f32.partialorder %v1295_v0, 0.0  ;;  %v1448_v4 = vmul.f32 0.01, %v1295_v0  ;;  %v1510_v10 = vsel %vm1382_vm15, %v1291_v58, %v1446_v63 }
 0x15e   : > { %v1511_v7 = vsel %vm1383_vm0, %v1293_v61, %v1447_v2 }
 0x15f   : > { %v1298_v9 = vpop.f32.mrb[48].mxu0  ;;  %v1512_v11 = vsel %vm1384_vm1, %v1295_v0, %v1448_v4  ;;  %v1551_v12 = vpack.c.bf16 %v1511_v7, %v1509_v6 }
 0x160   : > { %v1299_v13 = vadd.f32 %v1298_v9, %v2705_v40  ;;  %v1300_v14 = vpop.f32.mrb[49].mxu0  ;;  %v1552_v15 = vpack.c.bf16 %v1512_v11, %v1510_v10 }
 0x161   : > { %v1301_v16 = vadd.f32 %v1300_v14, %v2707_v41  ;;  %v1302_v8 = vpop.f32.mrb[50].mxu0 }
 0x162   : > { %v1449_v25 = vmul.f32 0.01, %v1299_v13  ;;  %v1303_v17 = vadd.f32 %v1302_v8, %v2705_v40  ;;  %v1304_v18 = vpop.f32.mrb[51].mxu0  ;;  %1816 = vmatprep.mubr.bf16.mxu1 %v1552_v15  ;;  %vm1385_vm2 = vcmp.ge.f32.partialorder %v1299_v13, 0.0 }
 0x163   : > { %v1450_v19 = vmul.f32 0.01, %v1301_v16  ;;  %v1305_v20 = vadd.f32 %v1304_v18, %v2707_v41  ;;  %1817 = vmatmul.mubr.bf16.gmra.mrb[40].mxu1 %v1551_v12  ;;  %vm1386_vm3 = vcmp.ge.f32.partialorder %v1301_v16, 0.0 }
 0x164   : > { %vm1387_vm4 = vcmp.ge.f32.partialorder %v1303_v17, 0.0  ;;  %v1451_v21 = vmul.f32 0.01, %v1303_v17  ;;  %v1513_v23 = vsel %vm1385_vm2, %v1299_v13, %v1449_v25 }
 0x165   : > { %vm1388_vm5 = vcmp.ge.f32.partialorder %v1305_v20, 0.0  ;;  %v1452_v22 = vmul.f32 0.01, %v1305_v20  ;;  %v1514_v27 = vsel %vm1386_vm3, %v1301_v16, %v1450_v19 }
 0x166   : > { %v1515_v24 = vsel %vm1387_vm4, %v1303_v17, %v1451_v21 }
 0x167   : > { %v1308_v26 = vpop.f32.mrb[52].mxu0  ;;  %v1516_v28 = vsel %vm1388_vm5, %v1305_v20, %v1452_v22  ;;  %v1553_v29 = vpack.c.bf16 %v1515_v24, %v1513_v23 }
 0x168   : > { %v1309_v30 = vadd.f32 %v1308_v26, %v2705_v40  ;;  %v1310_v31 = vpop.f32.mrb[53].mxu0  ;;  %v1554_v32 = vpack.c.bf16 %v1516_v28, %v1514_v27 }
 0x169   : > { %v1311_v33 = vadd.f32 %v1310_v31, %v2707_v41  ;;  %v1312_v34 = vpop.f32.mrb[54].mxu0 }
 0x16a   : > { %v1453_v35 = vmul.f32 0.01, %v1309_v30  ;;  %v1313_v36 = vadd.f32 %v1312_v34, %v2705_v40  ;;  %v1314_v37 = vpop.f32.mrb[55].mxu0  ;;  %1824 = vmatprep.mubr.bf16.mxu1 %v1554_v32  ;;  %vm1389_vm6 = vcmp.ge.f32.partialorder %v1309_v30, 0.0 }
 0x16b   : > { %v1454_v38 = vmul.f32 0.01, %v1311_v33  ;;  %v1315_v39 = vadd.f32 %v1314_v37, %v2707_v41  ;;  %1825 = vmatmul.mubr.bf16.gmra.mrb[44].mxu1 %v1553_v29  ;;  %vm1390_vm7 = vcmp.ge.f32.partialorder %v1311_v33, 0.0 }
 0x16c   : > { %vm1391_vm8 = vcmp.ge.f32.partialorder %v1313_v36, 0.0  ;;  %v1455_v42 = vmul.f32 0.01, %v1313_v36  ;;  %v1517_v44 = vsel %vm1389_vm6, %v1309_v30, %v1453_v35 }
 0x16d   : > { %vm1392_vm9 = vcmp.ge.f32.partialorder %v1315_v39, 0.0  ;;  %v1456_v43 = vmul.f32 0.01, %v1315_v39  ;;  %v1518_v46 = vsel %vm1390_vm7, %v1311_v33, %v1454_v38 }
 0x16e   : > { %v1519_v5 = vsel %vm1391_vm8, %v1313_v36, %v1455_v42 }
 0x16f   : > { %v1318_v45 = vpop.f32.mrb[56].mxu0  ;;  %v1520_v3 = vsel %vm1392_vm9, %v1315_v39, %v1456_v43  ;;  %v1555_v47 = vpack.c.bf16 %v1519_v5, %v1517_v44 }
 0x170   : > { %v1319_v48 = vadd.f32 %v1318_v45, %v2705_v40  ;;  %v1320_v49 = vpop.f32.mrb[57].mxu0  ;;  %v1556_v50 = vpack.c.bf16 %v1520_v3, %v1518_v46 }
 0x171   : > { %v1321_v51 = vadd.f32 %v1320_v49, %v2707_v41  ;;  %v1322_v52 = vpop.f32.mrb[58].mxu0 }
 0x172   : > { %v1457_v53 = vmul.f32 0.01, %v1319_v48  ;;  %v1323_v54 = vadd.f32 %v1322_v52, %v2705_v40  ;;  %v1324_v55 = vpop.f32.mrb[59].mxu0  ;;  %1832 = vmatprep.mubr.bf16.mxu1 %v1556_v50  ;;  %vm1393_vm10 = vcmp.ge.f32.partialorder %v1319_v48, 0.0 }
 0x173   : > { %v1458_v56 = vmul.f32 0.01, %v1321_v51  ;;  %v1325_v57 = vadd.f32 %v1324_v55, %v2707_v41  ;;  %1833 = vmatmul.mubr.bf16.gmra.mrb[48].mxu1 %v1555_v47  ;;  %vm1394_vm11 = vcmp.ge.f32.partialorder %v1321_v51, 0.0 }
 0x174   : > { %vm1395_vm12 = vcmp.ge.f32.partialorder %v1323_v54, 0.0  ;;  %v1459_v58 = vmul.f32 0.01, %v1323_v54  ;;  %v1521_v60 = vsel %vm1393_vm10, %v1319_v48, %v1457_v53 }
 0x175   : > { %vm1396_vm13 = vcmp.ge.f32.partialorder %v1325_v57, 0.0  ;;  %v1460_v59 = vmul.f32 0.01, %v1325_v57  ;;  %v1522_v63 = vsel %vm1394_vm11, %v1321_v51, %v1458_v56 }
 0x176   : > { %v1523_v61 = vsel %vm1395_vm12, %v1323_v54, %v1459_v58 }
 0x177   : > { %v1328_v62 = vpop.f32.mrb[60].mxu0  ;;  %v1524_v0 = vsel %vm1396_vm13, %v1325_v57, %v1460_v59  ;;  %v1557_v2 = vpack.c.bf16 %v1523_v61, %v1521_v60 }
 0x178   : > { %v1329_v4 = vadd.f32 %v1328_v62, %v2705_v40  ;;  %v1330_v6 = vpop.f32.mrb[61].mxu0  ;;  %v1558_v7 = vpack.c.bf16 %v1524_v0, %v1522_v63 }
 0x179   : > { %v1331_v9 = vadd.f32 %v1330_v6, %v2707_v41  ;;  %v1332_v10 = vpop.f32.mrb[62].mxu0 }
 0x17a   : > { %v1461_v11 = vmul.f32 0.01, %v1329_v4  ;;  %v1333_v12 = vadd.f32 %v1332_v10, %v2705_v40  ;;  %v1334_v13 = vpop.f32.mrb[63].mxu0  ;;  %1840 = vmatprep.mubr.bf16.mxu1 %v1558_v7  ;;  %vm1397_vm14 = vcmp.ge.f32.partialorder %v1329_v4, 0.0 }
 0x17b   : > { %v1462_v14 = vmul.f32 0.01, %v1331_v9  ;;  %v1335_v15 = vadd.f32 %v1334_v13, %v2707_v41  ;;  %1841 = vmatmul.mubr.bf16.gmra.mrb[52].mxu1 %v1557_v2  ;;  %vm1398_vm15 = vcmp.ge.f32.partialorder %v1331_v9, 0.0  ;;  %v2779_v41 = vld [vmem:[%s2902_s3] ss:$0 sm:$0xff] }
 0x17c   : > { %vm1399_vm0 = vcmp.ge.f32.partialorder %v1333_v12, 0.0  ;;  %v1463_v16 = vmul.f32 0.01, %v1333_v12  ;;  %v1525_v25 = vsel %vm1397_vm14, %v1329_v4, %v1461_v11 }
 0x17d   : > { %vm1400_vm1 = vcmp.ge.f32.partialorder %v1335_v15, 0.0  ;;  %v1464_v8 = vmul.f32 0.01, %v1335_v15  ;;  %v1526_v18 = vsel %vm1398_vm15, %v1331_v9, %v1462_v14 }
 0x17e   : > { %v1527_v17 = vsel %vm1399_vm0, %v1333_v12, %v1463_v16 }
 0x17f   : > { %v1528_v19 = vsel %vm1400_vm1, %v1335_v15, %v1464_v8  ;;  %v1559_v20 = vpack.c.bf16 %v1527_v17, %v1525_v25 }
 0x180   : > { %v1560_v40 = vpack.c.bf16 %v1528_v19, %v1526_v18 }
 0x182   : > { %1848 = vmatprep.mubr.bf16.mxu1 %v1560_v40 }
 0x183   : > { %1849 = vmatmul.mubr.bf16.gmra.mrb[56].mxu1 %v1559_v20 }
 0x1de   : > { %v2080_v21 = vpop.f32.mrb[64].mxu0 }
 0x1df   : > { %v2081_v22 = vpop.f32.mrb[65].mxu0 }
 0x1e0   : > { %v2082_v23 = vadd.f32 %v2081_v22, %v2080_v21  ;;  %v2083_v24 = vpop.f32.mrb[66].mxu0 }
 0x1e1   : > { %v2084_v26 = vpop.f32.mrb[67].mxu0 }
 0x1e2   : > { %v1731_v27 = vadd.f32 %v2082_v23, %v2779_v41  ;;  %v2085_v28 = vadd.f32 %v2084_v26, %v2083_v24 }
 0x1e4   : > { %1857 = vst [vmem:[%s2782_s17] sm:$0xff] %v1731_v27  ;;  %v1734_v29 = vadd.f32 %v2085_v28, %v2779_v41 }
 0x1e6   : > { %1858 = vst [vmem:[%s2782_s17 + $0x8] sm:$0xff] %v1734_v29  ;;  %v2086_v30 = vpop.f32.mrb[0].mxu1 }
 0x1e7   : > { %v2087_v31 = vpop.f32.mrb[1].mxu1 }
 0x1e8   : > { %v2088_v32 = vadd.f32 %v2087_v31, %v2086_v30  ;;  %v2089_v33 = vpop.f32.mrb[2].mxu1 }
 0x1e9   : > { %v2090_v34 = vpop.f32.mrb[3].mxu1 }
 0x1ea   : > { %v1739_v35 = vadd.f32 %v2088_v32, %v2779_v41  ;;  %v2091_v36 = vadd.f32 %v2090_v34, %v2089_v33 }
 0x1ec   : > { %1859 = vst [vmem:[%s2782_s17 + $0x10] sm:$0xff] %v1739_v35  ;;  %v1742_v37 = vadd.f32 %v2091_v36, %v2779_v41 }
 0x1ee   : > { %1860 = vst [vmem:[%s2782_s17 + $0x18] sm:$0xff] %v1742_v37  ;;  %v2092_v38 = vpop.f32.mrb[4].mxu1 }
 0x1ef   : > { %v2093_v39 = vpop.f32.mrb[5].mxu1 }
 0x1f0   : > { %v2094_v42 = vadd.f32 %v2093_v39, %v2092_v38  ;;  %v2095_v43 = vpop.f32.mrb[6].mxu1 }
 0x1f1   : > { %v2096_v44 = vpop.f32.mrb[7].mxu1 }
 0x1f2   : > { %v1747_v5 = vadd.f32 %v2094_v42, %v2779_v41  ;;  %v2097_v45 = vadd.f32 %v2096_v44, %v2095_v43 }
 0x1f4   : > { %1861 = vst [vmem:[%s2782_s17 + $0x20] sm:$0xff] %v1747_v5  ;;  %v1750_v46 = vadd.f32 %v2097_v45, %v2779_v41 }
 0x1f6   : > { %1862 = vst [vmem:[%s2782_s17 + $0x28] sm:$0xff] %v1750_v46  ;;  %v2098_v3 = vpop.f32.mrb[8].mxu1 }
 0x1f7   : > { %v2099_v47 = vpop.f32.mrb[9].mxu1 }
 0x1f8   : > { %v2100_v48 = vadd.f32 %v2099_v47, %v2098_v3  ;;  %v2101_v49 = vpop.f32.mrb[10].mxu1 }
 0x1f9   : > { %v2102_v50 = vpop.f32.mrb[11].mxu1 }
 0x1fa   : > { %v1755_v51 = vadd.f32 %v2100_v48, %v2779_v41  ;;  %v2103_v52 = vadd.f32 %v2102_v50, %v2101_v49 }
 0x1fc   : > { %1863 = vst [vmem:[%s2782_s17 + $0x30] sm:$0xff] %v1755_v51  ;;  %v1758_v53 = vadd.f32 %v2103_v52, %v2779_v41 }
 0x1fe   : > { %1864 = vst [vmem:[%s2782_s17 + $0x38] sm:$0xff] %v1758_v53  ;;  %v2104_v54 = vpop.f32.mrb[12].mxu1 }
 0x1ff   : > { %v2105_v55 = vpop.f32.mrb[13].mxu1 }
 0x200   : > { %v2106_v56 = vadd.f32 %v2105_v55, %v2104_v54  ;;  %v2107_v57 = vpop.f32.mrb[14].mxu1 }
 0x201   : > { %v2108_v58 = vpop.f32.mrb[15].mxu1 }
 0x202   : > { %v1763_v59 = vadd.f32 %v2106_v56, %v2779_v41  ;;  %v2109_v60 = vadd.f32 %v2108_v58, %v2107_v57 }
 0x204   : > { %1865 = vst [vmem:[%s2782_s17 + $0x40] sm:$0xff] %v1763_v59  ;;  %v1766_v61 = vadd.f32 %v2109_v60, %v2779_v41 }
 0x206   : > { %1866 = vst [vmem:[%s2782_s17 + $0x48] sm:$0xff] %v1766_v61  ;;  %v2110_v62 = vpop.f32.mrb[16].mxu1 }
 0x207   : > { %v2111_v63 = vpop.f32.mrb[17].mxu1 }
 0x208   : > { %v2112_v0 = vadd.f32 %v2111_v63, %v2110_v62  ;;  %v2113_v2 = vpop.f32.mrb[18].mxu1 }
 0x209   : > { %v2114_v4 = vpop.f32.mrb[19].mxu1 }
 0x20a   : > { %v1771_v6 = vadd.f32 %v2112_v0, %v2779_v41  ;;  %v2115_v7 = vadd.f32 %v2114_v4, %v2113_v2 }
 0x20c   : > { %1867 = vst [vmem:[%s2782_s17 + $0x50] sm:$0xff] %v1771_v6  ;;  %v1774_v9 = vadd.f32 %v2115_v7, %v2779_v41 }
 0x20e   : > { %1868 = vst [vmem:[%s2782_s17 + $0x58] sm:$0xff] %v1774_v9  ;;  %v2116_v10 = vpop.f32.mrb[20].mxu1 }
 0x20f   : > { %v2117_v11 = vpop.f32.mrb[21].mxu1 }
 0x210   : > { %v2118_v12 = vadd.f32 %v2117_v11, %v2116_v10  ;;  %v2119_v13 = vpop.f32.mrb[22].mxu1 }
 0x211   : > { %v2120_v14 = vpop.f32.mrb[23].mxu1 }
 0x212   : > { %v1779_v15 = vadd.f32 %v2118_v12, %v2779_v41  ;;  %v2121_v16 = vadd.f32 %v2120_v14, %v2119_v13 }
 0x214   : > { %1869 = vst [vmem:[%s2782_s17 + $0x60] sm:$0xff] %v1779_v15  ;;  %v1782_v8 = vadd.f32 %v2121_v16, %v2779_v41 }
 0x216   : > { %1870 = vst [vmem:[%s2782_s17 + $0x68] sm:$0xff] %v1782_v8  ;;  %v2122_v25 = vpop.f32.mrb[24].mxu1 }
 0x217   : > { %v2123_v17 = vpop.f32.mrb[25].mxu1 }
 0x218   : > { %v2124_v18 = vadd.f32 %v2123_v17, %v2122_v25  ;;  %v2125_v19 = vpop.f32.mrb[26].mxu1 }
 0x219   : > { %v2126_v20 = vpop.f32.mrb[27].mxu1 }
 0x21a   : > { %v1787_v40 = vadd.f32 %v2124_v18, %v2779_v41  ;;  %v2127_v21 = vadd.f32 %v2126_v20, %v2125_v19 }
 0x21c   : > { %1871 = vst [vmem:[%s2782_s17 + $0x70] sm:$0xff] %v1787_v40  ;;  %v1790_v22 = vadd.f32 %v2127_v21, %v2779_v41 }
 0x21e   : > { %1872 = vst [vmem:[%s2782_s17 + $0x78] sm:$0xff] %v1790_v22  ;;  %v2128_v23 = vpop.f32.mrb[28].mxu1 }
 0x21f   : > { %v2129_v24 = vpop.f32.mrb[29].mxu1 }
 0x220   : > { %v2130_v26 = vadd.f32 %v2129_v24, %v2128_v23  ;;  %v2131_v27 = vpop.f32.mrb[30].mxu1 }
 0x221   : > { %v2132_v28 = vpop.f32.mrb[31].mxu1 }
 0x222   : > { %v1795_v29 = vadd.f32 %v2130_v26, %v2779_v41  ;;  %v2133_v30 = vadd.f32 %v2132_v28, %v2131_v27 }
 0x224   : > { %1873 = vst [vmem:[%s2782_s17 + $0x80] sm:$0xff] %v1795_v29  ;;  %v1798_v31 = vadd.f32 %v2133_v30, %v2779_v41 }
 0x226   : > { %1874 = vst [vmem:[%s2782_s17 + $0x88] sm:$0xff] %v1798_v31  ;;  %v2134_v32 = vpop.f32.mrb[32].mxu1 }
 0x227   : > { %v2135_v33 = vpop.f32.mrb[33].mxu1 }
 0x228   : > { %v2136_v34 = vadd.f32 %v2135_v33, %v2134_v32  ;;  %v2137_v35 = vpop.f32.mrb[34].mxu1 }
 0x229   : > { %v2138_v36 = vpop.f32.mrb[35].mxu1 }
 0x22a   : > { %v1803_v37 = vadd.f32 %v2136_v34, %v2779_v41  ;;  %v2139_v38 = vadd.f32 %v2138_v36, %v2137_v35 }
 0x22c   : > { %1875 = vst [vmem:[%s2782_s17 + $0x90] sm:$0xff] %v1803_v37  ;;  %v1806_v39 = vadd.f32 %v2139_v38, %v2779_v41 }
 0x22e   : > { %1876 = vst [vmem:[%s2782_s17 + $0x98] sm:$0xff] %v1806_v39  ;;  %v2140_v42 = vpop.f32.mrb[36].mxu1 }
 0x22f   : > { %v2141_v43 = vpop.f32.mrb[37].mxu1 }
 0x230   : > { %v2142_v44 = vadd.f32 %v2141_v43, %v2140_v42  ;;  %v2143_v5 = vpop.f32.mrb[38].mxu1 }
 0x231   : > { %v2144_v45 = vpop.f32.mrb[39].mxu1 }
 0x232   : > { %v1811_v46 = vadd.f32 %v2142_v44, %v2779_v41  ;;  %v2145_v3 = vadd.f32 %v2144_v45, %v2143_v5 }
 0x234   : > { %1877 = vst [vmem:[%s2782_s17 + $0xa0] sm:$0xff] %v1811_v46  ;;  %v1814_v47 = vadd.f32 %v2145_v3, %v2779_v41 }
 0x236   : > { %1878 = vst [vmem:[%s2782_s17 + $0xa8] sm:$0xff] %v1814_v47  ;;  %v2146_v48 = vpop.f32.mrb[40].mxu1 }
 0x237   : > { %v2147_v49 = vpop.f32.mrb[41].mxu1 }
 0x238   : > { %v2148_v50 = vadd.f32 %v2147_v49, %v2146_v48  ;;  %v2149_v51 = vpop.f32.mrb[42].mxu1 }
 0x239   : > { %v2150_v52 = vpop.f32.mrb[43].mxu1 }
 0x23a   : > { %v1819_v53 = vadd.f32 %v2148_v50, %v2779_v41  ;;  %v2151_v54 = vadd.f32 %v2150_v52, %v2149_v51 }
 0x23c   : > { %1879 = vst [vmem:[%s2782_s17 + $0xb0] sm:$0xff] %v1819_v53  ;;  %v1822_v55 = vadd.f32 %v2151_v54, %v2779_v41 }
 0x23e   : > { %1880 = vst [vmem:[%s2782_s17 + $0xb8] sm:$0xff] %v1822_v55  ;;  %v2152_v56 = vpop.f32.mrb[44].mxu1 }
 0x23f   : > { %v2153_v57 = vpop.f32.mrb[45].mxu1 }
 0x240   : > { %v2154_v58 = vadd.f32 %v2153_v57, %v2152_v56  ;;  %v2155_v59 = vpop.f32.mrb[46].mxu1 }
 0x241   : > { %v2156_v60 = vpop.f32.mrb[47].mxu1 }
 0x242   : > { %v1827_v61 = vadd.f32 %v2154_v58, %v2779_v41  ;;  %v2157_v62 = vadd.f32 %v2156_v60, %v2155_v59 }
 0x244   : > { %1881 = vst [vmem:[%s2782_s17 + $0xc0] sm:$0xff] %v1827_v61  ;;  %v1830_v63 = vadd.f32 %v2157_v62, %v2779_v41 }
 0x246   : > { %1882 = vst [vmem:[%s2782_s17 + $0xc8] sm:$0xff] %v1830_v63  ;;  %v2158_v0 = vpop.f32.mrb[48].mxu1 }
 0x247   : > { %v2159_v2 = vpop.f32.mrb[49].mxu1 }
 0x248   : > { %v2160_v4 = vadd.f32 %v2159_v2, %v2158_v0  ;;  %v2161_v6 = vpop.f32.mrb[50].mxu1 }
 0x249   : > { %v2162_v7 = vpop.f32.mrb[51].mxu1 }
 0x24a   : > { %v1835_v9 = vadd.f32 %v2160_v4, %v2779_v41  ;;  %v2163_v10 = vadd.f32 %v2162_v7, %v2161_v6 }
 0x24c   : > { %1883 = vst [vmem:[%s2782_s17 + $0xd0] sm:$0xff] %v1835_v9  ;;  %v1838_v11 = vadd.f32 %v2163_v10, %v2779_v41 }
 0x24e   : > { %1884 = vst [vmem:[%s2782_s17 + $0xd8] sm:$0xff] %v1838_v11  ;;  %v2164_v12 = vpop.f32.mrb[52].mxu1 }
 0x24f   : > { %v2165_v13 = vpop.f32.mrb[53].mxu1 }
 0x250   : > { %v2166_v14 = vadd.f32 %v2165_v13, %v2164_v12  ;;  %v2167_v15 = vpop.f32.mrb[54].mxu1 }
 0x251   : > { %v2168_v16 = vpop.f32.mrb[55].mxu1 }
 0x252   : > { %v1843_v8 = vadd.f32 %v2166_v14, %v2779_v41  ;;  %v2169_v25 = vadd.f32 %v2168_v16, %v2167_v15 }
 0x254   : > { %1885 = vst [vmem:[%s2782_s17 + $0xe0] sm:$0xff] %v1843_v8  ;;  %v1846_v17 = vadd.f32 %v2169_v25, %v2779_v41 }
 0x256   : > { %1886 = vst [vmem:[%s2782_s17 + $0xe8] sm:$0xff] %v1846_v17  ;;  %v2170_v18 = vpop.f32.mrb[56].mxu1 }
 0x257   : > { %v2171_v19 = vpop.f32.mrb[57].mxu1 }
 0x258   : > { %v2172_v20 = vadd.f32 %v2171_v19, %v2170_v18  ;;  %v2173_v40 = vpop.f32.mrb[58].mxu1 }
 0x259   : > { %v2174_v21 = vpop.f32.mrb[59].mxu1 }
 0x25a   : > { %v1851_v22 = vadd.f32 %v2172_v20, %v2779_v41  ;;  %v2175_v23 = vadd.f32 %v2174_v21, %v2173_v40 }
 0x25c   : > { %1887 = vst [vmem:[%s2782_s17 + $0xf0] sm:$0xff] %v1851_v22  ;;  %v1854_v24 = vadd.f32 %v2175_v23, %v2779_v41 }
 0x25e   : > { %1888 = vst [vmem:[%s2782_s17 + $0xf8] sm:$0xff] %v1854_v24 }
 0x25f   : > { %2289 = shalt.err (!%p2286_p3)
}
 0x260   : > { %s2290_s11 = scalar_lea.hbm %s2849_s22, 4096  ;;  %s2294_s14 = scalar_lea.hbm %s2905_s6, 8192 }
 0x261   : > { %p2291_p4 = scmp.ne.s32.totalorder %s2849_s22, %s2290_s11  ;;  %p2295_p9 = scmp.lt.u32.totalorder %s2849_s22, %s2905_s6 }
 0x262   : > { %p2296_p10 = scmp.lt.u32.totalorder %s2294_s14, %s2290_s11  ;;  %p2298_p12 = scmp.lt.u32.totalorder %s2290_s11, %s2849_s22 }
 0x263   : > { %p2292_p7 = pnand %p2291_p4, %p2423_p5 }
 0x264   : > { %p2297_p11 = por %p2296_p10, %p2295_p9 }
 0x265   : > { %p2293_p8 = pneg %p2292_p7 }
 0x266   : > { %p2299_p13 = por %p2298_p12, %p2297_p11 }
 0x268   : > { %p2300_p0 = pnand %p2299_p13, %p2293_p8 }
 0x26a   : > { %2303 = shalt.err (!%p2300_p0)
}
 0x26b   : > { %s2343_s17 = smov 128   ;;  %s2344_s18 = smov 8  }
 0x26c   : > { %2192 = dma.vmem_to_hbm [thread:$0]  (%p2423_p5), %s2851_s19, 4096, %s2849_s22, %s2858_s5, %s2343_s17, %s2343_s17, %s2344_s18  }
 0x26d PF: > { %p2198_p1 = scmp.ge.s32.totalorder %s2338_s26, 2  ;;  %s1918_s20 = sand.u32 1, %s2326_s23  }
 0x26e   : > { %s1919_s21 = scalar_lea.sflag [#allocation8], %s1918_s20 }
 0x26f   : > { %p2195_p2 = pnand %p2198_p1, %p2427_p6 }
 0x271   : > { %2321 = dma.done.wait (!%p2195_p2), %s1919_s21, 4096  }
 0x272   : > { %2323 = vsyncadd (!%p2195_p2), %s1919_s21, 4294963200  ;;  %p21_p3 = scmp.ge.s32.totalorder %s2410_s28, 4   ;;  %s2908_s23 = smov %s2330_s24 }
 0x273   : > { %s2909_s24 = smov %s2334_s25  ;;  %s2910_s25 = smov %s2421_s7 }
 0x274   : > { %s2911_s26 = smov %s2410_s28  ;;  %23 = sbr.rel (!%p21_p3) target bundleno = 6 (0x6), region = 137 }
 0x27b   :  { %1924 = vsyncpa [#allocation8], 1 }
 0x27c   :  { %1926 = vsyncpa [#allocation8 + $0x1], 1 }

// kernel: _from_rgb_impl.1
= control target key start
LH: loop header
LB: loop body
LE: loop exit
PB: predicated region body
PF: predicated region fallthrough
CT: control target
= control target key end

     0   :  { %10 = vsyncpa [#allocation3], 0  ;;  %s1999_s0 = inlined_call_operand.vmem [shape: bf16[512,48], index: 0, kind: input, shape index: {}]   ;;  %s2000_s1 = inlined_call_operand.vmem [shape: bf16[48,256], index: 1, kind: input, shape index: {}]   ;;  %s2001_s2 = inlined_call_operand.vmem [shape: f32[1,256], index: 2, kind: input, shape index: {}]   ;;  %s2002_s3 = inlined_call_operand.vmem [shape: bf16[256,128], index: 3, kind: input, shape index: {}]   ;;  %s2003_s4 = inlined_call_operand.vmem [shape: f32[1,128], index: 4, kind: input, shape index: {}]   ;;  %s2004_s5 = inlined_call_operand.hbm [shape: f32[512,128], index: 5, kind: output, shape index: {}]  }
   0x1   :  { %12 = vsyncpa [#allocation3 + $0x1], 0  ;;  %s1634_s18 = smov 0   ;;  %s1636_s19 = smov 0  }
   0x2   :  { %s1638_s20 = smov 0   ;;  %s1640_s21 = smov 0  }
   0x3 LB: > { %s1655_s22 = sadd.s32 4294967295, %s1598_s21   ;;  %s1257_s23 = sadd.s32 4294967294, %s1598_s21   ;;  %s1598_s21 = sphi %s1640_s21, %s2010_s21   ;;  %s1594_s20 = sphi %s1638_s20, %s2009_s20   ;;  %s1590_s19 = sphi %s1636_s19, %s2008_s19   ;;  %s1586_s18 = sphi %s1634_s18, %s2007_s18  }
   0x4   : > { %s1659_s24 = sadd.s32 1, %s1598_s21   ;;  %s135_s25 = sadd.s32 1, %s1594_s20 }
   0x5   : > { %s132_s26 = ssub.s32 %s1598_s21, %s1659_s24  ;;  %p145_p0 = scmp.ne.s32.totalorder %s1594_s20, %s1590_s19 }
   0x6   : > { %p133_p1 = scmp.eq.s32.totalorder %s132_s26, 0  ;;  %p146_p2 = scmp.eq.s32.totalorder %s1655_s22, 1 }
   0x7   : > { %p151_p3 = scmp.ne.s32.totalorder %s1590_s19, %s1586_s18  ;;  %p152_p4 = scmp.eq.s32.totalorder %s1257_s23, 1 }
   0x8   : > { %s1670_s27 = scalar_select %p133_p1, %s1594_s20, %s135_s25  }
   0x9   : > { %p1672_p5 = por %p146_p2, %p145_p0  ;;  %p1676_p6 = por %p152_p4, %p151_p3 }
   0xa   : > { %p1260_p7 = scmp.ge.s32.totalorder %s1598_s21, 1  ;;  %p191_p8 = scmp.lt.s32.totalorder %s1598_s21, 3 }
   0xc   : > { %p192_p9 = pnand %p1260_p7, %p191_p8 }
   0xd   : > { %v1495_v0 = vld [vmem:[%s2000_s1 + $0x4] ss:$8 sps:$4 sm:$0xff] (!%p192_p9)   ;;  %s1262_s7 = sshll.u32 (!%p192_p9), %s1655_s22, 5  ;;  %v1497_v1 = vld [vmem:[%s2000_s1] ss:$8 sps:$4 sm:$0xff] (!%p192_p9)   ;;  %v1600_v2 = vmov (!%p192_p9), 0   ;;  %v267_v39 = vlaneseq (!%p192_p9) }
   0xe   : > { %195 = sbr.rel (%p192_p9) target bundleno = 603 (0x25b), region = 40  ;;  %468 = vmatprep.mubr.bf16.mxu0 (!%p192_p9), %v1600_v2  ;;  %p220_p10 = scmp.lt.s32.totalorder (!%p192_p9), %s1262_s7, 63  ;;  %436 = vmatprep.subr.bf16.mxu0 (!%p192_p9), %v1495_v0  ;;  %v1498_v3 = vld [vmem:[%s2000_s1 + $0x14] ss:$8 sps:$4 sm:$0xff] (!%p192_p9)   ;;  %v1500_v4 = vld [vmem:[%s2000_s1 + $0x10] ss:$8 sps:$4 sm:$0xff] (!%p192_p9)  }
   0xf   : > { %437 = vmatpush1.bf16.msra.mxu0 (!%p192_p9), %v1497_v1  ;;  %v1501_v5 = vld [vmem:[%s2000_s1 + $0x24] ss:$8 sps:$4 sm:$0xff] (!%p192_p9)   ;;  %v1503_v6 = vld [vmem:[%s2000_s1 + $0x20] ss:$8 sps:$4 sm:$0xff] (!%p192_p9)   ;;  %vm387_vm0 = vcmask (!%p192_p9), 392192   ;;  %v1524_v13 = vld [vmem:[%s2002_s3 + $0x50] sm:$0xff] (!%p192_p9)  }
  0x10   : > { %438 = vmatprep.subr.bf16.mxu0 (!%p192_p9), %v1498_v3  ;;  %v1520_v7 = vld [vmem:[%s2002_s3 + $0x40] sm:$0xff] (!%p192_p9)   ;;  %v1522_v11 = vld [vmem:[%s2002_s3 + $0x48] sm:$0xff] (!%p192_p9)   ;;  %v1525_v15 = vld [vmem:[%s2002_s3 + $0x10] sm:$0xff] (!%p192_p9)   ;;  %v268_v40 = vshrl.u32 (!%p192_p9), %v267_v39, 7  ;;  %s1324_s14 = sshll.u32 (!%p192_p9), %s1655_s22, 12  ;;  %s1601_s26 = smov (!%p192_p9), [#allocation2]  }
  0x11   : > { %v1521_v8 = vld [vmem:[%s2002_s3] sm:$0xff] (!%p192_p9)   ;;  %1437 = vmatprep.subr.bf16.mxu1 (!%p192_p9), %v1520_v7  ;;  %v1523_v12 = vld [vmem:[%s2002_s3 + $0x8] sm:$0xff] (!%p192_p9)   ;;  %v1526_v16 = vld [vmem:[%s2002_s3 + $0x58] sm:$0xff] (!%p192_p9)   ;;  %s1949_s23 = scalar_lea.hbm (!%p192_p9), %s2004_s5, %s1324_s14  ;;  %s1540_s6 = sshll.u32 (!%p192_p9), %s1601_s26, 4  ;;  %s1541_s6 = int_to_ptr.vmem [resolvable:$false] %s1540_s6 }
  0x12   : > { %1445 = vmatpush3.bf16.msra.mxu1 (!%p192_p9), %v1521_v8  ;;  %v1527_v17 = vld [vmem:[%s2002_s3 + $0x18] sm:$0xff] (!%p192_p9)   ;;  %v1528_v18 = vld [vmem:[%s2002_s3 + $0x60] sm:$0xff] (!%p192_p9)   ;;  %v1530_v28 = vld [vmem:[%s2002_s3 + $0x68] sm:$0xff] (!%p192_p9)   ;;  %v269_v41 = vsub.s32 (!%p192_p9), 0, %v268_v40  ;;  %v273_v43 = vsub.s32 (!%p192_p9), 1, %v268_v40  ;;  %s1542_s8 = scalar_lea.vmem (!%p192_p9), %s1541_s6, 8192 }
  0x13   : > { %439 = vmatpush1.bf16.msra.mxu0 (!%p192_p9), %v1500_v4  ;;  %1438 = vmatprep.subr.bf16.mxu1 (!%p192_p9), %v1522_v11  ;;  %v1529_v20 = vld [vmem:[%s2002_s3 + $0x20] sm:$0xff] (!%p192_p9)   ;;  %v1531_v29 = vld [vmem:[%s2002_s3 + $0x28] sm:$0xff] (!%p192_p9)   ;;  %v1532_v31 = vld [vmem:[%s2002_s3 + $0x70] sm:$0xff] (!%p192_p9)  }
  0x14   : > { %440 = vmatprep.subr.bf16.mxu0 (!%p192_p9), %v1501_v5  ;;  %v1533_v32 = vld [vmem:[%s2002_s3 + $0x30] sm:$0xff] (!%p192_p9)   ;;  %v1534_v33 = vld [vmem:[%s2002_s3 + $0x78] sm:$0xff] (!%p192_p9)   ;;  %v265_v42 = vld [vmem:[%s2001_s2] sm:$0x3] (!%p192_p9) }
  0x15   : > { %s2012_s7 = smov (!%p220_p10, %s1262_s7), 63  ;;  %v1535_v34 = vld [vmem:[%s2002_s3 + $0x38] sm:$0xff]   ;;  %v1805_v44 = vrot.slane %v265_v42, %v269_v41  ;;  %v1807_v45 = vrot.slane %v265_v42, %v273_v43 }
  0x16   : > { %s1263_s16 = sshll.u32 %s2012_s7, 2  ;;  %1446 = vmatpush3.bf16.msra.mxu1 %v1523_v12 }
  0x17   : > { %s1705_s30 = scalar_lea.vmem %s1999_s0, %s1263_s16  ;;  %441 = vmatpush1.bf16.msra.mxu0 %v1503_v6  ;;  %1439 = vmatprep.subr.bf16.mxu1 %v1524_v13 }
  0x18   : > { %v1504_v9 = vld [vmem:[%s1705_s30] sm:$0xff]   ;;  %1325 = vmatprep.subr.bf16.mxu0 %v1520_v7  ;;  %v1505_v10 = vld [vmem:[%s1705_s30 + $0x8] sm:$0xff]   ;;  %v1506_v14 = vld [vmem:[%s1705_s30 + $0x10] sm:$0xff]  }
  0x19   : > { %v1507_v19 = vld [vmem:[%s1705_s30 + $0x18] sm:$0xff]   ;;  %v1508_v21 = vld [vmem:[%s1705_s30 + $0x20] sm:$0xff]   ;;  %v1509_v22 = vld [vmem:[%s1705_s30 + $0x28] sm:$0xff]  }
  0x1a   : > { %1286 = vmatmul.mubr.msk.bf16.vlgmr.msra.gmra.mrb[0].mxu0 %vm387_vm0, %v1504_v9  ;;  %1447 = vmatpush3.bf16.msra.mxu1 %v1525_v15  ;;  %v1510_v23 = vld [vmem:[%s1705_s30 + $0x30] sm:$0xff]   ;;  %v1511_v24 = vld [vmem:[%s1705_s30 + $0x38] sm:$0xff]   ;;  %v1512_v25 = vld [vmem:[%s1705_s30 + $0x40] sm:$0xff]  }
  0x1b   : > { %478 = vmatprep.mubr.bf16.mxu0 %v1600_v2  ;;  %1326 = vmatpush3.bf16.msra.mxu0 %v1521_v8  ;;  %v1513_v26 = vld [vmem:[%s1705_s30 + $0x48] sm:$0xff]   ;;  %v1514_v27 = vld [vmem:[%s1705_s30 + $0x50] sm:$0xff]   ;;  %v1515_v30 = vld [vmem:[%s1705_s30 + $0x58] sm:$0xff]  }
  0x1c   : > { %1327 = vmatprep.subr.bf16.mxu0 %v1522_v11  ;;  %1440 = vmatprep.subr.bf16.mxu1 %v1526_v16  ;;  %v1516_v35 = vld [vmem:[%s1705_s30 + $0x60] sm:$0xff]   ;;  %v1517_v36 = vld [vmem:[%s1705_s30 + $0x68] sm:$0xff]   ;;  %v1518_v37 = vld [vmem:[%s1705_s30 + $0x70] sm:$0xff]  }
  0x1d   : > { %v1519_v38 = vld [vmem:[%s1705_s30 + $0x78] sm:$0xff]   ;;  %s216_s30 = sand.u32 1, %s1590_s19  }
  0x1e   : > { %1448 = vmatpush3.bf16.msra.mxu1 %v1527_v17  ;;  %s1261_s7 = sshll.u32 %s216_s30, 8  ;;  %s1958_s22 = scalar_lea.sflag [#allocation3], %s216_s30 }
  0x1f   : > { %1328 = vmatpush3.bf16.msra.mxu0 %v1523_v12  ;;  %1441 = vmatprep.subr.bf16.mxu1 %v1528_v18  ;;  %s1882_s13 = scalar_lea.vmem [#allocation2], %s1261_s7 }
  0x20   : > { %1329 = vmatprep.subr.bf16.mxu0 %v1524_v13  ;;  %s1195_s15 = sshll.u32 %s1882_s13, 4  ;;  %s1951_s15 = int_to_ptr.vmem [resolvable:$true] %s1195_s15 }
  0x21   : > { %s1536_s25 = scalar_lea.vmem %s1951_s15, 4096  ;;  %p1543_p0 = scmp.lt.s32.totalorder %s1951_s15, %s1541_s6 }
  0x22   : > { %1287 = vmatmul.mubr.msk.bf16.gmra.mrb[4].mxu0 %vm387_vm0, %v1505_v10  ;;  %1449 = vmatpush3.bf16.msra.mxu1 %v1529_v20  ;;  %p1537_p11 = scmp.ne.s32.totalorder %s1951_s15, %s1536_s25  ;;  %p1544_p1 = scmp.lt.s32.totalorder %s1542_s8, %s1536_s25 }
  0x23   : > { %488 = vmatprep.mubr.bf16.mxu0 %v1600_v2  ;;  %1330 = vmatpush3.bf16.msra.mxu0 %v1525_v15 }
  0x24   : > { %1331 = vmatprep.subr.bf16.mxu0 %v1526_v16  ;;  %1442 = vmatprep.subr.bf16.mxu1 %v1530_v28  ;;  %p1538_p12 = pnand %p1537_p11, %p1672_p5  ;;  %p1545_p2 = por %p1544_p1, %p1543_p0 }
  0x26   : > { %1450 = vmatpush3.bf16.msra.mxu1 %v1531_v29  ;;  %p1539_p13 = pneg %p1538_p12 }
  0x27   : > { %1332 = vmatpush3.bf16.msra.mxu0 %v1527_v17  ;;  %1443 = vmatprep.subr.bf16.mxu1 %v1532_v31 }
  0x28   : > { %1333 = vmatprep.subr.bf16.mxu0 %v1528_v18  ;;  %p1546_p3 = pnand %p1545_p2, %p1539_p13 }
  0x2a   : > { %1288 = vmatmul.mubr.msk.bf16.gmra.mrb[8].mxu0 %vm387_vm0, %v1506_v14  ;;  %1451 = vmatpush3.bf16.msra.mxu1 %v1533_v32 }
  0x2b   : > { %498 = vmatprep.mubr.bf16.mxu0 %v1600_v2  ;;  %1334 = vmatpush3.bf16.msra.mxu0 %v1529_v20 }
  0x2c   : > { %1335 = vmatprep.subr.bf16.mxu0 %v1530_v28  ;;  %1444 = vmatprep.subr.bf16.mxu1 %v1534_v33 }
  0x2e   : > { %1452 = vmatpush3.bf16.msra.mxu1 %v1535_v34 }
  0x2f   : > { %1336 = vmatpush3.bf16.msra.mxu0 %v1531_v29 }
  0x30   : > { %1337 = vmatprep.subr.bf16.mxu0 %v1532_v31 }
  0x32   : > { %1289 = vmatmul.mubr.msk.bf16.gmra.mrb[12].mxu0 %vm387_vm0, %v1507_v19 }
  0x33   : > { %508 = vmatprep.mubr.bf16.mxu0 %v1600_v2  ;;  %1338 = vmatpush3.bf16.msra.mxu0 %v1533_v32 }
  0x34   : > { %1339 = vmatprep.subr.bf16.mxu0 %v1534_v33 }
  0x37   : > { %1340 = vmatpush3.bf16.msra.mxu0 %v1535_v34 }
  0x3a   : > { %1290 = vmatmul.mubr.msk.bf16.gmra.mrb[16].mxu0 %vm387_vm0, %v1508_v21 }
  0x3b   : > { %518 = vmatprep.mubr.bf16.mxu0 %v1600_v2 }
  0x42   : > { %1291 = vmatmul.mubr.msk.bf16.gmra.mrb[20].mxu0 %vm387_vm0, %v1509_v22 }
  0x43   : > { %528 = vmatprep.mubr.bf16.mxu0 %v1600_v2 }
  0x4a   : > { %1292 = vmatmul.mubr.msk.bf16.gmra.mrb[24].mxu0 %vm387_vm0, %v1510_v23 }
  0x4b   : > { %538 = vmatprep.mubr.bf16.mxu0 %v1600_v2 }
  0x52   : > { %1293 = vmatmul.mubr.msk.bf16.gmra.mrb[28].mxu0 %vm387_vm0, %v1511_v24 }
  0x53   : > { %548 = vmatprep.mubr.bf16.mxu0 %v1600_v2 }
  0x5a   : > { %1294 = vmatmul.mubr.msk.bf16.gmra.mrb[32].mxu0 %vm387_vm0, %v1512_v25 }
  0x5b   : > { %558 = vmatprep.mubr.bf16.mxu0 %v1600_v2 }
  0x62   : > { %1295 = vmatmul.mubr.msk.bf16.gmra.mrb[36].mxu0 %vm387_vm0, %v1513_v26 }
  0x63   : > { %568 = vmatprep.mubr.bf16.mxu0 %v1600_v2 }
  0x6a   : > { %1296 = vmatmul.mubr.msk.bf16.gmra.mrb[40].mxu0 %vm387_vm0, %v1514_v27 }
  0x6b   : > { %578 = vmatprep.mubr.bf16.mxu0 %v1600_v2 }
  0x72   : > { %1297 = vmatmul.mubr.msk.bf16.gmra.mrb[44].mxu0 %vm387_vm0, %v1515_v30 }
  0x73   : > { %588 = vmatprep.mubr.bf16.mxu0 %v1600_v2 }
  0x7a   : > { %1298 = vmatmul.mubr.msk.bf16.gmra.mrb[48].mxu0 %vm387_vm0, %v1516_v35 }
  0x7b   : > { %598 = vmatprep.mubr.bf16.mxu0 %v1600_v2 }
  0x82   : > { %1299 = vmatmul.mubr.msk.bf16.gmra.mrb[52].mxu0 %vm387_vm0, %v1517_v36 }
  0x83   : > { %608 = vmatprep.mubr.bf16.mxu0 %v1600_v2 }
  0x8a   : > { %1300 = vmatmul.mubr.msk.bf16.gmra.mrb[56].mxu0 %vm387_vm0, %v1518_v37 }
  0x8b   : > { %618 = vmatprep.mubr.bf16.mxu0 %v1600_v2 }
  0x92   : > { %1301 = vmatmul.mubr.msk.bf16.gmra.mrb[60].mxu0 %vm387_vm0, %v1519_v38 }
  0xed   : > { %v470_v46 = vpop.f32.mrb[0].mxu0 }
  0xee   : > { %v471_v47 = vadd.f32 %v470_v46, %v1805_v44  ;;  %v472_v48 = vpop.f32.mrb[1].mxu0 }
  0xef   : > { %v473_v49 = vadd.f32 %v472_v48, %v1807_v45  ;;  %v474_v50 = vpop.f32.mrb[2].mxu0 }
  0xf0   : > { %v693_v51 = vmul.f32 0.01, %v471_v47  ;;  %v475_v52 = vadd.f32 %v474_v50, %v1805_v44  ;;  %v476_v53 = vpop.f32.mrb[3].mxu0  ;;  %vm629_vm1 = vcmp.ge.f32.partialorder %v471_v47, 0.0 }
  0xf1   : > { %v694_v54 = vmul.f32 0.01, %v473_v49  ;;  %v477_v55 = vadd.f32 %v476_v53, %v1807_v45  ;;  %vm630_vm2 = vcmp.ge.f32.partialorder %v473_v49, 0.0 }
  0xf2   : > { %vm631_vm3 = vcmp.ge.f32.partialorder %v475_v52, 0.0  ;;  %v695_v56 = vmul.f32 0.01, %v475_v52  ;;  %v757_v58 = vsel %vm629_vm1, %v471_v47, %v693_v51 }
  0xf3   : > { %vm632_vm4 = vcmp.ge.f32.partialorder %v477_v55, 0.0  ;;  %v696_v57 = vmul.f32 0.01, %v477_v55  ;;  %v758_v62 = vsel %vm630_vm2, %v473_v49, %v694_v54 }
  0xf4   : > { %v759_v59 = vsel %vm631_vm3, %v475_v52, %v695_v56 }
  0xf5   : > { %v821_v60 = vpack.c.bf16 %v759_v59, %v757_v58  ;;  %v480_v61 = vpop.f32.mrb[4].mxu0  ;;  %v760_v63 = vsel %vm632_vm4, %v477_v55, %v696_v57 }
  0xf6   : > { %v481_v0 = vadd.f32 %v480_v61, %v1805_v44  ;;  %v482_v1 = vpop.f32.mrb[5].mxu0  ;;  %v822_v2 = vpack.c.bf16 %v760_v63, %v758_v62 }
  0xf7   : > { %v483_v3 = vadd.f32 %v482_v1, %v1807_v45  ;;  %v484_v4 = vpop.f32.mrb[6].mxu0 }
  0xf8   : > { %v697_v5 = vmul.f32 0.01, %v481_v0  ;;  %v485_v6 = vadd.f32 %v484_v4, %v1805_v44  ;;  %v486_v7 = vpop.f32.mrb[7].mxu0  ;;  %1020 = vmatprep.mubr.bf16.mxu0 %v822_v2  ;;  %vm633_vm5 = vcmp.ge.f32.partialorder %v481_v0, 0.0 }
  0xf9   : > { %v698_v8 = vmul.f32 0.01, %v483_v3  ;;  %v487_v9 = vadd.f32 %v486_v7, %v1807_v45  ;;  %1021 = vmatmul.mubr.bf16.vlgmr.msra.gmra.mrb[64].mxu0 %v821_v60  ;;  %vm634_vm7 = vcmp.ge.f32.partialorder %v483_v3, 0.0 }
  0xfa   : > { %vm635_vm6 = vcmp.ge.f32.partialorder %v485_v6, 0.0  ;;  %v699_v10 = vmul.f32 0.01, %v485_v6  ;;  %v761_v12 = vsel %vm633_vm5, %v481_v0, %v697_v5 }
  0xfb   : > { %v700_v11 = vmul.f32 0.01, %v487_v9  ;;  %vm636_vm8 = vcmp.ge.f32.partialorder %v487_v9, 0.0  ;;  %v762_v15 = vsel %vm634_vm7, %v483_v3, %v698_v8 }
  0xfc   : > { %v763_v13 = vsel %vm635_vm6, %v485_v6, %v699_v10 }
  0xfd   : > { %v490_v14 = vpop.f32.mrb[8].mxu0  ;;  %v764_v16 = vsel %vm636_vm8, %v487_v9, %v700_v11  ;;  %v823_v17 = vpack.c.bf16 %v763_v13, %v761_v12 }
  0xfe   : > { %v491_v18 = vadd.f32 %v490_v14, %v1805_v44  ;;  %v492_v19 = vpop.f32.mrb[9].mxu0  ;;  %v824_v20 = vpack.c.bf16 %v764_v16, %v762_v15 }
  0xff   : > { %v493_v21 = vadd.f32 %v492_v19, %v1807_v45  ;;  %v494_v22 = vpop.f32.mrb[10].mxu0 }
 0x100   : > { %v701_v23 = vmul.f32 0.01, %v491_v18  ;;  %v495_v24 = vadd.f32 %v494_v22, %v1805_v44  ;;  %v496_v25 = vpop.f32.mrb[11].mxu0  ;;  %1028 = vmatprep.mubr.bf16.mxu1 %v824_v20  ;;  %vm637_vm9 = vcmp.ge.f32.partialorder %v491_v18, 0.0 }
 0x101   : > { %v702_v26 = vmul.f32 0.01, %v493_v21  ;;  %v497_v27 = vadd.f32 %v496_v25, %v1807_v45  ;;  %1029 = vmatmul.mubr.bf16.vlgmr.msra.gmra.mrb[0].mxu1 %v823_v17  ;;  %vm638_vm10 = vcmp.ge.f32.partialorder %v493_v21, 0.0 }
 0x102   : > { %vm639_vm11 = vcmp.ge.f32.partialorder %v495_v24, 0.0  ;;  %v703_v28 = vmul.f32 0.01, %v495_v24  ;;  %v765_v30 = vsel %vm637_vm9, %v491_v18, %v701_v23 }
 0x103   : > { %vm640_vm12 = vcmp.ge.f32.partialorder %v497_v27, 0.0  ;;  %v704_v29 = vmul.f32 0.01, %v497_v27  ;;  %v766_v33 = vsel %vm638_vm10, %v493_v21, %v702_v26 }
 0x104   : > { %v767_v31 = vsel %vm639_vm11, %v495_v24, %v703_v28 }
 0x105   : > { %v500_v32 = vpop.f32.mrb[12].mxu0  ;;  %v768_v34 = vsel %vm640_vm12, %v497_v27, %v704_v29  ;;  %v825_v35 = vpack.c.bf16 %v767_v31, %v765_v30 }
 0x106   : > { %v501_v36 = vadd.f32 %v500_v32, %v1805_v44  ;;  %v502_v37 = vpop.f32.mrb[13].mxu0  ;;  %v826_v38 = vpack.c.bf16 %v768_v34, %v766_v33 }
 0x107   : > { %v503_v39 = vadd.f32 %v502_v37, %v1807_v45  ;;  %v504_v40 = vpop.f32.mrb[14].mxu0 }
 0x108   : > { %v705_v41 = vmul.f32 0.01, %v501_v36  ;;  %v505_v42 = vadd.f32 %v504_v40, %v1805_v44  ;;  %v506_v43 = vpop.f32.mrb[15].mxu0  ;;  %1036 = vmatprep.mubr.bf16.mxu1 %v826_v38  ;;  %vm641_vm13 = vcmp.ge.f32.partialorder %v501_v36, 0.0 }
 0x109   : > { %v706_v46 = vmul.f32 0.01, %v503_v39  ;;  %v507_v47 = vadd.f32 %v506_v43, %v1807_v45  ;;  %1037 = vmatmul.mubr.bf16.gmra.mrb[4].mxu1 %v825_v35  ;;  %vm642_vm14 = vcmp.ge.f32.partialorder %v503_v39, 0.0 }
 0x10a   : > { %vm643_vm15 = vcmp.ge.f32.partialorder %v505_v42, 0.0  ;;  %v707_v48 = vmul.f32 0.01, %v505_v42  ;;  %v769_v50 = vsel %vm641_vm13, %v501_v36, %v705_v41 }
 0x10b   : > { %vm644_vm0 = vcmp.ge.f32.partialorder %v507_v47, 0.0  ;;  %v708_v49 = vmul.f32 0.01, %v507_v47  ;;  %v770_v53 = vsel %vm642_vm14, %v503_v39, %v706_v46 }
 0x10c   : > { %v771_v51 = vsel %vm643_vm15, %v505_v42, %v707_v48 }
 0x10d   : > { %v510_v52 = vpop.f32.mrb[16].mxu0  ;;  %v772_v54 = vsel %vm644_vm0, %v507_v47, %v708_v49  ;;  %v827_v55 = vpack.c.bf16 %v771_v51, %v769_v50 }
 0x10e   : > { %v511_v56 = vadd.f32 %v510_v52, %v1805_v44  ;;  %v512_v57 = vpop.f32.mrb[17].mxu0  ;;  %v828_v58 = vpack.c.bf16 %v772_v54, %v770_v53 }
 0x10f   : > { %v513_v59 = vadd.f32 %v512_v57, %v1807_v45  ;;  %v514_v60 = vpop.f32.mrb[18].mxu0 }
 0x110   : > { %v709_v61 = vmul.f32 0.01, %v511_v56  ;;  %v515_v62 = vadd.f32 %v514_v60, %v1805_v44  ;;  %v516_v63 = vpop.f32.mrb[19].mxu0  ;;  %1044 = vmatprep.mubr.bf16.mxu1 %v828_v58  ;;  %vm645_vm1 = vcmp.ge.f32.partialorder %v511_v56, 0.0 }
 0x111   : > { %v710_v0 = vmul.f32 0.01, %v513_v59  ;;  %v517_v1 = vadd.f32 %v516_v63, %v1807_v45  ;;  %1045 = vmatmul.mubr.bf16.gmra.mrb[8].mxu1 %v827_v55  ;;  %vm646_vm2 = vcmp.ge.f32.partialorder %v513_v59, 0.0 }
 0x112   : > { %vm647_vm3 = vcmp.ge.f32.partialorder %v515_v62, 0.0  ;;  %v711_v2 = vmul.f32 0.01, %v515_v62  ;;  %v773_v4 = vsel %vm645_vm1, %v511_v56, %v709_v61 }
 0x113   : > { %vm648_vm4 = vcmp.ge.f32.partialorder %v517_v1, 0.0  ;;  %v712_v3 = vmul.f32 0.01, %v517_v1  ;;  %v774_v7 = vsel %vm646_vm2, %v513_v59, %v710_v0 }
 0x114   : > { %v775_v5 = vsel %vm647_vm3, %v515_v62, %v711_v2 }
 0x115   : > { %v520_v6 = vpop.f32.mrb[20].mxu0  ;;  %v776_v8 = vsel %vm648_vm4, %v517_v1, %v712_v3  ;;  %v829_v9 = vpack.c.bf16 %v775_v5, %v773_v4 }
 0x116   : > { %v521_v10 = vadd.f32 %v520_v6, %v1805_v44  ;;  %v522_v11 = vpop.f32.mrb[21].mxu0  ;;  %v830_v12 = vpack.c.bf16 %v776_v8, %v774_v7 }
 0x117   : > { %v523_v13 = vadd.f32 %v522_v11, %v1807_v45  ;;  %v524_v14 = vpop.f32.mrb[22].mxu0 }
 0x118   : > { %v713_v15 = vmul.f32 0.01, %v521_v10  ;;  %v525_v16 = vadd.f32 %v524_v14, %v1805_v44  ;;  %v526_v17 = vpop.f32.mrb[23].mxu0  ;;  %1052 = vmatprep.mubr.bf16.mxu1 %v830_v12  ;;  %vm649_vm5 = vcmp.ge.f32.partialorder %v521_v10, 0.0 }
 0x119   : > { %v714_v18 = vmul.f32 0.01, %v523_v13  ;;  %v527_v19 = vadd.f32 %v526_v17, %v1807_v45  ;;  %1053 = vmatmul.mubr.bf16.gmra.mrb[12].mxu1 %v829_v9  ;;  %vm650_vm6 = vcmp.ge.f32.partialorder %v523_v13, 0.0 }
 0x11a   : > { %vm651_vm7 = vcmp.ge.f32.partialorder %v525_v16, 0.0  ;;  %v715_v20 = vmul.f32 0.01, %v525_v16  ;;  %v777_v22 = vsel %vm649_vm5, %v521_v10, %v713_v15 }
 0x11b   : > { %vm652_vm8 = vcmp.ge.f32.partialorder %v527_v19, 0.0  ;;  %v716_v21 = vmul.f32 0.01, %v527_v19  ;;  %v778_v25 = vsel %vm650_vm6, %v523_v13, %v714_v18 }
 0x11c   : > { %v779_v23 = vsel %vm651_vm7, %v525_v16, %v715_v20 }
 0x11d   : > { %v530_v24 = vpop.f32.mrb[24].mxu0  ;;  %v780_v26 = vsel %vm652_vm8, %v527_v19, %v716_v21  ;;  %v831_v27 = vpack.c.bf16 %v779_v23, %v777_v22 }
 0x11e   : > { %v531_v28 = vadd.f32 %v530_v24, %v1805_v44  ;;  %v532_v29 = vpop.f32.mrb[25].mxu0  ;;  %v832_v30 = vpack.c.bf16 %v780_v26, %v778_v25 }
 0x11f   : > { %v533_v31 = vadd.f32 %v532_v29, %v1807_v45  ;;  %v534_v32 = vpop.f32.mrb[26].mxu0 }
 0x120   : > { %v717_v33 = vmul.f32 0.01, %v531_v28  ;;  %v535_v34 = vadd.f32 %v534_v32, %v1805_v44  ;;  %v536_v35 = vpop.f32.mrb[27].mxu0  ;;  %1060 = vmatprep.mubr.bf16.mxu1 %v832_v30  ;;  %vm653_vm9 = vcmp.ge.f32.partialorder %v531_v28, 0.0 }
 0x121   : > { %v718_v36 = vmul.f32 0.01, %v533_v31  ;;  %v537_v37 = vadd.f32 %v536_v35, %v1807_v45  ;;  %1061 = vmatmul.mubr.bf16.gmra.mrb[16].mxu1 %v831_v27  ;;  %vm654_vm10 = vcmp.ge.f32.partialorder %v533_v31, 0.0 }
 0x122   : > { %vm655_vm11 = vcmp.ge.f32.partialorder %v535_v34, 0.0  ;;  %v719_v38 = vmul.f32 0.01, %v535_v34  ;;  %v781_v40 = vsel %vm653_vm9, %v531_v28, %v717_v33 }
 0x123   : > { %vm656_vm12 = vcmp.ge.f32.partialorder %v537_v37, 0.0  ;;  %v720_v39 = vmul.f32 0.01, %v537_v37  ;;  %v782_v43 = vsel %vm654_vm10, %v533_v31, %v718_v36 }
 0x124   : > { %v783_v41 = vsel %vm655_vm11, %v535_v34, %v719_v38 }
 0x125   : > { %v540_v42 = vpop.f32.mrb[28].mxu0  ;;  %v784_v46 = vsel %vm656_vm12, %v537_v37, %v720_v39  ;;  %v833_v47 = vpack.c.bf16 %v783_v41, %v781_v40 }
 0x126   : > { %v541_v48 = vadd.f32 %v540_v42, %v1805_v44  ;;  %v542_v49 = vpop.f32.mrb[29].mxu0  ;;  %v834_v50 = vpack.c.bf16 %v784_v46, %v782_v43 }
 0x127   : > { %v543_v51 = vadd.f32 %v542_v49, %v1807_v45  ;;  %v544_v52 = vpop.f32.mrb[30].mxu0 }
 0x128   : > { %v721_v53 = vmul.f32 0.01, %v541_v48  ;;  %v545_v54 = vadd.f32 %v544_v52, %v1805_v44  ;;  %v546_v55 = vpop.f32.mrb[31].mxu0  ;;  %1068 = vmatprep.mubr.bf16.mxu1 %v834_v50  ;;  %vm657_vm13 = vcmp.ge.f32.partialorder %v541_v48, 0.0 }
 0x129   : > { %v722_v56 = vmul.f32 0.01, %v543_v51  ;;  %v547_v57 = vadd.f32 %v546_v55, %v1807_v45  ;;  %1069 = vmatmul.mubr.bf16.gmra.mrb[20].mxu1 %v833_v47  ;;  %vm658_vm14 = vcmp.ge.f32.partialorder %v543_v51, 0.0 }
 0x12a   : > { %vm659_vm15 = vcmp.ge.f32.partialorder %v545_v54, 0.0  ;;  %v723_v58 = vmul.f32 0.01, %v545_v54  ;;  %v785_v60 = vsel %vm657_vm13, %v541_v48, %v721_v53 }
 0x12b   : > { %vm660_vm0 = vcmp.ge.f32.partialorder %v547_v57, 0.0  ;;  %v724_v59 = vmul.f32 0.01, %v547_v57  ;;  %v786_v63 = vsel %vm658_vm14, %v543_v51, %v722_v56 }
 0x12c   : > { %v787_v61 = vsel %vm659_vm15, %v545_v54, %v723_v58 }
 0x12d   : > { %v550_v62 = vpop.f32.mrb[32].mxu0  ;;  %v788_v0 = vsel %vm660_vm0, %v547_v57, %v724_v59  ;;  %v835_v1 = vpack.c.bf16 %v787_v61, %v785_v60 }
 0x12e   : > { %v551_v2 = vadd.f32 %v550_v62, %v1805_v44  ;;  %v552_v3 = vpop.f32.mrb[33].mxu0  ;;  %v836_v4 = vpack.c.bf16 %v788_v0, %v786_v63 }
 0x12f   : > { %v553_v5 = vadd.f32 %v552_v3, %v1807_v45  ;;  %v554_v6 = vpop.f32.mrb[34].mxu0 }
 0x130   : > { %v725_v7 = vmul.f32 0.01, %v551_v2  ;;  %v555_v8 = vadd.f32 %v554_v6, %v1805_v44  ;;  %v556_v9 = vpop.f32.mrb[35].mxu0  ;;  %1076 = vmatprep.mubr.bf16.mxu1 %v836_v4  ;;  %vm661_vm1 = vcmp.ge.f32.partialorder %v551_v2, 0.0 }
 0x131   : > { %v726_v10 = vmul.f32 0.01, %v553_v5  ;;  %v557_v11 = vadd.f32 %v556_v9, %v1807_v45  ;;  %1077 = vmatmul.mubr.bf16.gmra.mrb[24].mxu1 %v835_v1  ;;  %vm662_vm2 = vcmp.ge.f32.partialorder %v553_v5, 0.0 }
 0x132   : > { %vm663_vm3 = vcmp.ge.f32.partialorder %v555_v8, 0.0  ;;  %v727_v12 = vmul.f32 0.01, %v555_v8  ;;  %v789_v14 = vsel %vm661_vm1, %v551_v2, %v725_v7 }
 0x133   : > { %vm664_vm4 = vcmp.ge.f32.partialorder %v557_v11, 0.0  ;;  %v728_v13 = vmul.f32 0.01, %v557_v11  ;;  %v790_v17 = vsel %vm662_vm2, %v553_v5, %v726_v10 }
 0x134   : > { %v791_v15 = vsel %vm663_vm3, %v555_v8, %v727_v12 }
 0x135   : > { %v560_v16 = vpop.f32.mrb[36].mxu0  ;;  %v792_v18 = vsel %vm664_vm4, %v557_v11, %v728_v13  ;;  %v837_v19 = vpack.c.bf16 %v791_v15, %v789_v14 }
 0x136   : > { %v561_v20 = vadd.f32 %v560_v16, %v1805_v44  ;;  %v562_v21 = vpop.f32.mrb[37].mxu0  ;;  %v838_v22 = vpack.c.bf16 %v792_v18, %v790_v17 }
 0x137   : > { %v563_v23 = vadd.f32 %v562_v21, %v1807_v45  ;;  %v564_v24 = vpop.f32.mrb[38].mxu0 }
 0x138   : > { %v729_v25 = vmul.f32 0.01, %v561_v20  ;;  %v565_v26 = vadd.f32 %v564_v24, %v1805_v44  ;;  %v566_v27 = vpop.f32.mrb[39].mxu0  ;;  %1084 = vmatprep.mubr.bf16.mxu1 %v838_v22  ;;  %vm665_vm5 = vcmp.ge.f32.partialorder %v561_v20, 0.0 }
 0x139   : > { %v730_v28 = vmul.f32 0.01, %v563_v23  ;;  %v567_v29 = vadd.f32 %v566_v27, %v1807_v45  ;;  %1085 = vmatmul.mubr.bf16.gmra.mrb[28].mxu1 %v837_v19  ;;  %vm666_vm6 = vcmp.ge.f32.partialorder %v563_v23, 0.0 }
 0x13a   : > { %vm667_vm7 = vcmp.ge.f32.partialorder %v565_v26, 0.0  ;;  %v731_v30 = vmul.f32 0.01, %v565_v26  ;;  %v793_v32 = vsel %vm665_vm5, %v561_v20, %v729_v25 }
 0x13b   : > { %vm668_vm8 = vcmp.ge.f32.partialorder %v567_v29, 0.0  ;;  %v732_v31 = vmul.f32 0.01, %v567_v29  ;;  %v794_v35 = vsel %vm666_vm6, %v563_v23, %v730_v28 }
 0x13c   : > { %v795_v33 = vsel %vm667_vm7, %v565_v26, %v731_v30 }
 0x13d   : > { %v570_v34 = vpop.f32.mrb[40].mxu0  ;;  %v796_v36 = vsel %vm668_vm8, %v567_v29, %v732_v31  ;;  %v839_v37 = vpack.c.bf16 %v795_v33, %v793_v32 }
 0x13e   : > { %v571_v38 = vadd.f32 %v570_v34, %v1805_v44  ;;  %v572_v39 = vpop.f32.mrb[41].mxu0  ;;  %v840_v40 = vpack.c.bf16 %v796_v36, %v794_v35 }
 0x13f   : > { %v573_v41 = vadd.f32 %v572_v39, %v1807_v45  ;;  %v574_v42 = vpop.f32.mrb[42].mxu0 }
 0x140   : > { %v733_v43 = vmul.f32 0.01, %v571_v38  ;;  %v575_v46 = vadd.f32 %v574_v42, %v1805_v44  ;;  %v576_v47 = vpop.f32.mrb[43].mxu0  ;;  %1092 = vmatprep.mubr.bf16.mxu1 %v840_v40  ;;  %vm669_vm9 = vcmp.ge.f32.partialorder %v571_v38, 0.0 }
 0x141   : > { %v734_v48 = vmul.f32 0.01, %v573_v41  ;;  %v577_v49 = vadd.f32 %v576_v47, %v1807_v45  ;;  %1093 = vmatmul.mubr.bf16.gmra.mrb[32].mxu1 %v839_v37  ;;  %vm670_vm10 = vcmp.ge.f32.partialorder %v573_v41, 0.0 }
 0x142   : > { %vm671_vm11 = vcmp.ge.f32.partialorder %v575_v46, 0.0  ;;  %v735_v50 = vmul.f32 0.01, %v575_v46  ;;  %v797_v52 = vsel %vm669_vm9, %v571_v38, %v733_v43 }
 0x143   : > { %vm672_vm12 = vcmp.ge.f32.partialorder %v577_v49, 0.0  ;;  %v736_v51 = vmul.f32 0.01, %v577_v49  ;;  %v798_v55 = vsel %vm670_vm10, %v573_v41, %v734_v48 }
 0x144   : > { %v799_v53 = vsel %vm671_vm11, %v575_v46, %v735_v50 }
 0x145   : > { %v580_v54 = vpop.f32.mrb[44].mxu0  ;;  %v800_v56 = vsel %vm672_vm12, %v577_v49, %v736_v51  ;;  %v841_v57 = vpack.c.bf16 %v799_v53, %v797_v52 }
 0x146   : > { %v581_v58 = vadd.f32 %v580_v54, %v1805_v44  ;;  %v582_v59 = vpop.f32.mrb[45].mxu0  ;;  %v842_v60 = vpack.c.bf16 %v800_v56, %v798_v55 }
 0x147   : > { %v583_v61 = vadd.f32 %v582_v59, %v1807_v45  ;;  %v584_v62 = vpop.f32.mrb[46].mxu0 }
 0x148   : > { %v737_v63 = vmul.f32 0.01, %v581_v58  ;;  %v585_v0 = vadd.f32 %v584_v62, %v1805_v44  ;;  %v586_v1 = vpop.f32.mrb[47].mxu0  ;;  %1100 = vmatprep.mubr.bf16.mxu1 %v842_v60  ;;  %vm673_vm13 = vcmp.ge.f32.partialorder %v581_v58, 0.0 }
 0x149   : > { %v738_v2 = vmul.f32 0.01, %v583_v61  ;;  %v587_v3 = vadd.f32 %v586_v1, %v1807_v45  ;;  %1101 = vmatmul.mubr.bf16.gmra.mrb[36].mxu1 %v841_v57  ;;  %vm674_vm14 = vcmp.ge.f32.partialorder %v583_v61, 0.0 }
 0x14a   : > { %vm675_vm15 = vcmp.ge.f32.partialorder %v585_v0, 0.0  ;;  %v739_v4 = vmul.f32 0.01, %v585_v0  ;;  %v801_v6 = vsel %vm673_vm13, %v581_v58, %v737_v63 }
 0x14b   : > { %vm676_vm0 = vcmp.ge.f32.partialorder %v587_v3, 0.0  ;;  %v740_v5 = vmul.f32 0.01, %v587_v3  ;;  %v802_v9 = vsel %vm674_vm14, %v583_v61, %v738_v2 }
 0x14c   : > { %v803_v7 = vsel %vm675_vm15, %v585_v0, %v739_v4 }
 0x14d   : > { %v590_v8 = vpop.f32.mrb[48].mxu0  ;;  %v804_v10 = vsel %vm676_vm0, %v587_v3, %v740_v5  ;;  %v843_v11 = vpack.c.bf16 %v803_v7, %v801_v6 }
 0x14e   : > { %v591_v12 = vadd.f32 %v590_v8, %v1805_v44  ;;  %v592_v13 = vpop.f32.mrb[49].mxu0  ;;  %v844_v14 = vpack.c.bf16 %v804_v10, %v802_v9 }
 0x14f   : > { %v593_v15 = vadd.f32 %v592_v13, %v1807_v45  ;;  %v594_v16 = vpop.f32.mrb[50].mxu0 }
 0x150   : > { %v741_v17 = vmul.f32 0.01, %v591_v12  ;;  %v595_v18 = vadd.f32 %v594_v16, %v1805_v44  ;;  %v596_v19 = vpop.f32.mrb[51].mxu0  ;;  %1108 = vmatprep.mubr.bf16.mxu1 %v844_v14  ;;  %vm677_vm1 = vcmp.ge.f32.partialorder %v591_v12, 0.0 }
 0x151   : > { %v742_v20 = vmul.f32 0.01, %v593_v15  ;;  %v597_v21 = vadd.f32 %v596_v19, %v1807_v45  ;;  %1109 = vmatmul.mubr.bf16.gmra.mrb[40].mxu1 %v843_v11  ;;  %vm678_vm2 = vcmp.ge.f32.partialorder %v593_v15, 0.0 }
 0x152   : > { %vm679_vm3 = vcmp.ge.f32.partialorder %v595_v18, 0.0  ;;  %v743_v22 = vmul.f32 0.01, %v595_v18  ;;  %v805_v24 = vsel %vm677_vm1, %v591_v12, %v741_v17 }
 0x153   : > { %vm680_vm4 = vcmp.ge.f32.partialorder %v597_v21, 0.0  ;;  %v744_v23 = vmul.f32 0.01, %v597_v21  ;;  %v806_v27 = vsel %vm678_vm2, %v593_v15, %v742_v20 }
 0x154   : > { %v807_v25 = vsel %vm679_vm3, %v595_v18, %v743_v22 }
 0x155   : > { %v600_v26 = vpop.f32.mrb[52].mxu0  ;;  %v808_v28 = vsel %vm680_vm4, %v597_v21, %v744_v23  ;;  %v845_v29 = vpack.c.bf16 %v807_v25, %v805_v24 }
 0x156   : > { %v601_v30 = vadd.f32 %v600_v26, %v1805_v44  ;;  %v602_v31 = vpop.f32.mrb[53].mxu0  ;;  %v846_v32 = vpack.c.bf16 %v808_v28, %v806_v27 }
 0x157   : > { %v603_v33 = vadd.f32 %v602_v31, %v1807_v45  ;;  %v604_v34 = vpop.f32.mrb[54].mxu0 }
 0x158   : > { %v745_v35 = vmul.f32 0.01, %v601_v30  ;;  %v605_v36 = vadd.f32 %v604_v34, %v1805_v44  ;;  %v606_v37 = vpop.f32.mrb[55].mxu0  ;;  %1116 = vmatprep.mubr.bf16.mxu1 %v846_v32  ;;  %vm681_vm5 = vcmp.ge.f32.partialorder %v601_v30, 0.0 }
 0x159   : > { %v746_v38 = vmul.f32 0.01, %v603_v33  ;;  %v607_v39 = vadd.f32 %v606_v37, %v1807_v45  ;;  %1117 = vmatmul.mubr.bf16.gmra.mrb[44].mxu1 %v845_v29  ;;  %vm682_vm6 = vcmp.ge.f32.partialorder %v603_v33, 0.0 }
 0x15a   : > { %vm683_vm7 = vcmp.ge.f32.partialorder %v605_v36, 0.0  ;;  %v747_v40 = vmul.f32 0.01, %v605_v36  ;;  %v809_v42 = vsel %vm681_vm5, %v601_v30, %v745_v35 }
 0x15b   : > { %vm684_vm8 = vcmp.ge.f32.partialorder %v607_v39, 0.0  ;;  %v748_v41 = vmul.f32 0.01, %v607_v39  ;;  %v810_v47 = vsel %vm682_vm6, %v603_v33, %v746_v38 }
 0x15c   : > { %v811_v43 = vsel %vm683_vm7, %v605_v36, %v747_v40 }
 0x15d   : > { %v610_v46 = vpop.f32.mrb[56].mxu0  ;;  %v812_v48 = vsel %vm684_vm8, %v607_v39, %v748_v41  ;;  %v847_v49 = vpack.c.bf16 %v811_v43, %v809_v42 }
 0x15e   : > { %v611_v50 = vadd.f32 %v610_v46, %v1805_v44  ;;  %v612_v51 = vpop.f32.mrb[57].mxu0  ;;  %v848_v52 = vpack.c.bf16 %v812_v48, %v810_v47 }
 0x15f   : > { %v613_v53 = vadd.f32 %v612_v51, %v1807_v45  ;;  %v614_v54 = vpop.f32.mrb[58].mxu0 }
 0x160   : > { %v749_v55 = vmul.f32 0.01, %v611_v50  ;;  %v615_v56 = vadd.f32 %v614_v54, %v1805_v44  ;;  %v616_v57 = vpop.f32.mrb[59].mxu0  ;;  %1124 = vmatprep.mubr.bf16.mxu1 %v848_v52  ;;  %vm685_vm9 = vcmp.ge.f32.partialorder %v611_v50, 0.0 }
 0x161   : > { %v750_v58 = vmul.f32 0.01, %v613_v53  ;;  %v617_v59 = vadd.f32 %v616_v57, %v1807_v45  ;;  %1125 = vmatmul.mubr.bf16.gmra.mrb[48].mxu1 %v847_v49  ;;  %vm686_vm10 = vcmp.ge.f32.partialorder %v613_v53, 0.0 }
 0x162   : > { %vm687_vm11 = vcmp.ge.f32.partialorder %v615_v56, 0.0  ;;  %v751_v60 = vmul.f32 0.01, %v615_v56  ;;  %v813_v62 = vsel %vm685_vm9, %v611_v50, %v749_v55 }
 0x163   : > { %vm688_vm12 = vcmp.ge.f32.partialorder %v617_v59, 0.0  ;;  %v752_v61 = vmul.f32 0.01, %v617_v59  ;;  %v814_v1 = vsel %vm686_vm10, %v613_v53, %v750_v58 }
 0x164   : > { %v815_v63 = vsel %vm687_vm11, %v615_v56, %v751_v60 }
 0x165   : > { %v620_v0 = vpop.f32.mrb[60].mxu0  ;;  %v816_v2 = vsel %vm688_vm12, %v617_v59, %v752_v61  ;;  %v849_v3 = vpack.c.bf16 %v815_v63, %v813_v62 }
 0x166   : > { %v621_v4 = vadd.f32 %v620_v0, %v1805_v44  ;;  %v622_v5 = vpop.f32.mrb[61].mxu0  ;;  %v850_v6 = vpack.c.bf16 %v816_v2, %v814_v1 }
 0x167   : > { %v623_v7 = vadd.f32 %v622_v5, %v1807_v45  ;;  %v624_v8 = vpop.f32.mrb[62].mxu0 }
 0x168   : > { %v753_v9 = vmul.f32 0.01, %v621_v4  ;;  %v625_v10 = vadd.f32 %v624_v8, %v1805_v44  ;;  %v626_v11 = vpop.f32.mrb[63].mxu0  ;;  %1132 = vmatprep.mubr.bf16.mxu1 %v850_v6  ;;  %vm689_vm13 = vcmp.ge.f32.partialorder %v621_v4, 0.0 }
 0x169   : > { %v754_v12 = vmul.f32 0.01, %v623_v7  ;;  %v627_v13 = vadd.f32 %v626_v11, %v1807_v45  ;;  %1133 = vmatmul.mubr.bf16.gmra.mrb[52].mxu1 %v849_v3  ;;  %vm690_vm14 = vcmp.ge.f32.partialorder %v623_v7, 0.0  ;;  %v1879_v45 = vld [vmem:[%s2003_s4] ss:$0 sm:$0xff] }
 0x16a   : > { %vm691_vm15 = vcmp.ge.f32.partialorder %v625_v10, 0.0  ;;  %v755_v14 = vmul.f32 0.01, %v625_v10  ;;  %v817_v16 = vsel %vm689_vm13, %v621_v4, %v753_v9 }
 0x16b   : > { %vm692_vm0 = vcmp.ge.f32.partialorder %v627_v13, 0.0  ;;  %v756_v15 = vmul.f32 0.01, %v627_v13  ;;  %v818_v18 = vsel %vm690_vm14, %v623_v7, %v754_v12 }
 0x16c   : > { %v819_v17 = vsel %vm691_vm15, %v625_v10, %v755_v14 }
 0x16d   : > { %v820_v19 = vsel %vm692_vm0, %v627_v13, %v756_v15  ;;  %v851_v20 = vpack.c.bf16 %v819_v17, %v817_v16 }
 0x16e   : > { %v852_v44 = vpack.c.bf16 %v820_v19, %v818_v18 }
 0x170   : > { %1140 = vmatprep.mubr.bf16.mxu1 %v852_v44 }
 0x171   : > { %1141 = vmatmul.mubr.bf16.gmra.mrb[56].mxu1 %v851_v20 }
 0x1cc   : > { %v1341_v21 = vpop.f32.mrb[64].mxu0 }
 0x1cd   : > { %v1342_v22 = vpop.f32.mrb[65].mxu0 }
 0x1ce   : > { %v1343_v23 = vadd.f32 %v1342_v22, %v1341_v21  ;;  %v1344_v24 = vpop.f32.mrb[66].mxu0 }
 0x1cf   : > { %v1345_v25 = vpop.f32.mrb[67].mxu0 }
 0x1d0   : > { %v1023_v26 = vadd.f32 %v1343_v23, %v1879_v45  ;;  %v1346_v27 = vadd.f32 %v1345_v25, %v1344_v24 }
 0x1d2   : > { %1149 = vst [vmem:[%s1882_s13] sm:$0xff] %v1023_v26  ;;  %v1026_v28 = vadd.f32 %v1346_v27, %v1879_v45 }
 0x1d4   : > { %1150 = vst [vmem:[%s1882_s13 + $0x8] sm:$0xff] %v1026_v28  ;;  %v1347_v29 = vpop.f32.mrb[0].mxu1 }
 0x1d5   : > { %v1348_v30 = vpop.f32.mrb[1].mxu1 }
 0x1d6   : > { %v1349_v31 = vadd.f32 %v1348_v30, %v1347_v29  ;;  %v1350_v32 = vpop.f32.mrb[2].mxu1 }
 0x1d7   : > { %v1351_v33 = vpop.f32.mrb[3].mxu1 }
 0x1d8   : > { %v1031_v34 = vadd.f32 %v1349_v31, %v1879_v45  ;;  %v1352_v35 = vadd.f32 %v1351_v33, %v1350_v32 }
 0x1da   : > { %1151 = vst [vmem:[%s1882_s13 + $0x10] sm:$0xff] %v1031_v34  ;;  %v1034_v36 = vadd.f32 %v1352_v35, %v1879_v45 }
 0x1dc   : > { %1152 = vst [vmem:[%s1882_s13 + $0x18] sm:$0xff] %v1034_v36  ;;  %v1353_v37 = vpop.f32.mrb[4].mxu1 }
 0x1dd   : > { %v1354_v38 = vpop.f32.mrb[5].mxu1 }
 0x1de   : > { %v1355_v39 = vadd.f32 %v1354_v38, %v1353_v37  ;;  %v1356_v40 = vpop.f32.mrb[6].mxu1 }
 0x1df   : > { %v1357_v41 = vpop.f32.mrb[7].mxu1 }
 0x1e0   : > { %v1039_v42 = vadd.f32 %v1355_v39, %v1879_v45  ;;  %v1358_v43 = vadd.f32 %v1357_v41, %v1356_v40 }
 0x1e2   : > { %1153 = vst [vmem:[%s1882_s13 + $0x20] sm:$0xff] %v1039_v42  ;;  %v1042_v46 = vadd.f32 %v1358_v43, %v1879_v45 }
 0x1e4   : > { %1154 = vst [vmem:[%s1882_s13 + $0x28] sm:$0xff] %v1042_v46  ;;  %v1359_v47 = vpop.f32.mrb[8].mxu1 }
 0x1e5   : > { %v1360_v48 = vpop.f32.mrb[9].mxu1 }
 0x1e6   : > { %v1361_v49 = vadd.f32 %v1360_v48, %v1359_v47  ;;  %v1362_v50 = vpop.f32.mrb[10].mxu1 }
 0x1e7   : > { %v1363_v51 = vpop.f32.mrb[11].mxu1 }
 0x1e8   : > { %v1047_v52 = vadd.f32 %v1361_v49, %v1879_v45  ;;  %v1364_v53 = vadd.f32 %v1363_v51, %v1362_v50 }
 0x1ea   : > { %1155 = vst [vmem:[%s1882_s13 + $0x30] sm:$0xff] %v1047_v52  ;;  %v1050_v54 = vadd.f32 %v1364_v53, %v1879_v45 }
 0x1ec   : > { %1156 = vst [vmem:[%s1882_s13 + $0x38] sm:$0xff] %v1050_v54  ;;  %v1365_v55 = vpop.f32.mrb[12].mxu1 }
 0x1ed   : > { %v1366_v56 = vpop.f32.mrb[13].mxu1 }
 0x1ee   : > { %v1367_v57 = vadd.f32 %v1366_v56, %v1365_v55  ;;  %v1368_v58 = vpop.f32.mrb[14].mxu1 }
 0x1ef   : > { %v1369_v59 = vpop.f32.mrb[15].mxu1 }
 0x1f0   : > { %v1055_v60 = vadd.f32 %v1367_v57, %v1879_v45  ;;  %v1370_v61 = vadd.f32 %v1369_v59, %v1368_v58 }
 0x1f2   : > { %1157 = vst [vmem:[%s1882_s13 + $0x40] sm:$0xff] %v1055_v60  ;;  %v1058_v62 = vadd.f32 %v1370_v61, %v1879_v45 }
 0x1f4   : > { %1158 = vst [vmem:[%s1882_s13 + $0x48] sm:$0xff] %v1058_v62  ;;  %v1371_v63 = vpop.f32.mrb[16].mxu1 }
 0x1f5   : > { %v1372_v0 = vpop.f32.mrb[17].mxu1 }
 0x1f6   : > { %v1373_v1 = vadd.f32 %v1372_v0, %v1371_v63  ;;  %v1374_v2 = vpop.f32.mrb[18].mxu1 }
 0x1f7   : > { %v1375_v3 = vpop.f32.mrb[19].mxu1 }
 0x1f8   : > { %v1063_v4 = vadd.f32 %v1373_v1, %v1879_v45  ;;  %v1376_v5 = vadd.f32 %v1375_v3, %v1374_v2 }
 0x1fa   : > { %1159 = vst [vmem:[%s1882_s13 + $0x50] sm:$0xff] %v1063_v4  ;;  %v1066_v6 = vadd.f32 %v1376_v5, %v1879_v45 }
 0x1fc   : > { %1160 = vst [vmem:[%s1882_s13 + $0x58] sm:$0xff] %v1066_v6  ;;  %v1377_v7 = vpop.f32.mrb[20].mxu1 }
 0x1fd   : > { %v1378_v8 = vpop.f32.mrb[21].mxu1 }
 0x1fe   : > { %v1379_v9 = vadd.f32 %v1378_v8, %v1377_v7  ;;  %v1380_v10 = vpop.f32.mrb[22].mxu1 }
 0x1ff   : > { %v1381_v11 = vpop.f32.mrb[23].mxu1 }
 0x200   : > { %v1071_v12 = vadd.f32 %v1379_v9, %v1879_v45  ;;  %v1382_v13 = vadd.f32 %v1381_v11, %v1380_v10 }
 0x202   : > { %1161 = vst [vmem:[%s1882_s13 + $0x60] sm:$0xff] %v1071_v12  ;;  %v1074_v14 = vadd.f32 %v1382_v13, %v1879_v45 }
 0x204   : > { %1162 = vst [vmem:[%s1882_s13 + $0x68] sm:$0xff] %v1074_v14  ;;  %v1383_v15 = vpop.f32.mrb[24].mxu1 }
 0x205   : > { %v1384_v16 = vpop.f32.mrb[25].mxu1 }
 0x206   : > { %v1385_v17 = vadd.f32 %v1384_v16, %v1383_v15  ;;  %v1386_v18 = vpop.f32.mrb[26].mxu1 }
 0x207   : > { %v1387_v19 = vpop.f32.mrb[27].mxu1 }
 0x208   : > { %v1079_v20 = vadd.f32 %v1385_v17, %v1879_v45  ;;  %v1388_v44 = vadd.f32 %v1387_v19, %v1386_v18 }
 0x20a   : > { %1163 = vst [vmem:[%s1882_s13 + $0x70] sm:$0xff] %v1079_v20  ;;  %v1082_v21 = vadd.f32 %v1388_v44, %v1879_v45 }
 0x20c   : > { %1164 = vst [vmem:[%s1882_s13 + $0x78] sm:$0xff] %v1082_v21  ;;  %v1389_v22 = vpop.f32.mrb[28].mxu1 }
 0x20d   : > { %v1390_v23 = vpop.f32.mrb[29].mxu1 }
 0x20e   : > { %v1391_v24 = vadd.f32 %v1390_v23, %v1389_v22  ;;  %v1392_v25 = vpop.f32.mrb[30].mxu1 }
 0x20f   : > { %v1393_v26 = vpop.f32.mrb[31].mxu1 }
 0x210   : > { %v1087_v27 = vadd.f32 %v1391_v24, %v1879_v45  ;;  %v1394_v28 = vadd.f32 %v1393_v26, %v1392_v25 }
 0x212   : > { %1165 = vst [vmem:[%s1882_s13 + $0x80] sm:$0xff] %v1087_v27  ;;  %v1090_v29 = vadd.f32 %v1394_v28, %v1879_v45 }
 0x214   : > { %1166 = vst [vmem:[%s1882_s13 + $0x88] sm:$0xff] %v1090_v29  ;;  %v1395_v30 = vpop.f32.mrb[32].mxu1 }
 0x215   : > { %v1396_v31 = vpop.f32.mrb[33].mxu1 }
 0x216   : > { %v1397_v32 = vadd.f32 %v1396_v31, %v1395_v30  ;;  %v1398_v33 = vpop.f32.mrb[34].mxu1 }
 0x217   : > { %v1399_v34 = vpop.f32.mrb[35].mxu1 }
 0x218   : > { %v1095_v35 = vadd.f32 %v1397_v32, %v1879_v45  ;;  %v1400_v36 = vadd.f32 %v1399_v34, %v1398_v33 }
 0x21a   : > { %1167 = vst [vmem:[%s1882_s13 + $0x90] sm:$0xff] %v1095_v35  ;;  %v1098_v37 = vadd.f32 %v1400_v36, %v1879_v45 }
 0x21c   : > { %1168 = vst [vmem:[%s1882_s13 + $0x98] sm:$0xff] %v1098_v37  ;;  %v1401_v38 = vpop.f32.mrb[36].mxu1 }
 0x21d   : > { %v1402_v39 = vpop.f32.mrb[37].mxu1 }
 0x21e   : > { %v1403_v40 = vadd.f32 %v1402_v39, %v1401_v38  ;;  %v1404_v41 = vpop.f32.mrb[38].mxu1 }
 0x21f   : > { %v1405_v42 = vpop.f32.mrb[39].mxu1 }
 0x220   : > { %v1103_v43 = vadd.f32 %v1403_v40, %v1879_v45  ;;  %v1406_v46 = vadd.f32 %v1405_v42, %v1404_v41 }
 0x222   : > { %1169 = vst [vmem:[%s1882_s13 + $0xa0] sm:$0xff] %v1103_v43  ;;  %v1106_v47 = vadd.f32 %v1406_v46, %v1879_v45 }
 0x224   : > { %1170 = vst [vmem:[%s1882_s13 + $0xa8] sm:$0xff] %v1106_v47  ;;  %v1407_v48 = vpop.f32.mrb[40].mxu1 }
 0x225   : > { %v1408_v49 = vpop.f32.mrb[41].mxu1 }
 0x226   : > { %v1409_v50 = vadd.f32 %v1408_v49, %v1407_v48  ;;  %v1410_v51 = vpop.f32.mrb[42].mxu1 }
 0x227   : > { %v1411_v52 = vpop.f32.mrb[43].mxu1 }
 0x228   : > { %v1111_v53 = vadd.f32 %v1409_v50, %v1879_v45  ;;  %v1412_v54 = vadd.f32 %v1411_v52, %v1410_v51 }
 0x22a   : > { %1171 = vst [vmem:[%s1882_s13 + $0xb0] sm:$0xff] %v1111_v53  ;;  %v1114_v55 = vadd.f32 %v1412_v54, %v1879_v45 }
 0x22c   : > { %1172 = vst [vmem:[%s1882_s13 + $0xb8] sm:$0xff] %v1114_v55  ;;  %v1413_v56 = vpop.f32.mrb[44].mxu1 }
 0x22d   : > { %v1414_v57 = vpop.f32.mrb[45].mxu1 }
 0x22e   : > { %v1415_v58 = vadd.f32 %v1414_v57, %v1413_v56  ;;  %v1416_v59 = vpop.f32.mrb[46].mxu1 }
 0x22f   : > { %v1417_v60 = vpop.f32.mrb[47].mxu1 }
 0x230   : > { %v1119_v61 = vadd.f32 %v1415_v58, %v1879_v45  ;;  %v1418_v62 = vadd.f32 %v1417_v60, %v1416_v59 }
 0x232   : > { %1173 = vst [vmem:[%s1882_s13 + $0xc0] sm:$0xff] %v1119_v61  ;;  %v1122_v63 = vadd.f32 %v1418_v62, %v1879_v45 }
 0x234   : > { %1174 = vst [vmem:[%s1882_s13 + $0xc8] sm:$0xff] %v1122_v63  ;;  %v1419_v0 = vpop.f32.mrb[48].mxu1 }
 0x235   : > { %v1420_v1 = vpop.f32.mrb[49].mxu1 }
 0x236   : > { %v1421_v2 = vadd.f32 %v1420_v1, %v1419_v0  ;;  %v1422_v3 = vpop.f32.mrb[50].mxu1 }
 0x237   : > { %v1423_v4 = vpop.f32.mrb[51].mxu1 }
 0x238   : > { %v1127_v5 = vadd.f32 %v1421_v2, %v1879_v45  ;;  %v1424_v6 = vadd.f32 %v1423_v4, %v1422_v3 }
 0x23a   : > { %1175 = vst [vmem:[%s1882_s13 + $0xd0] sm:$0xff] %v1127_v5  ;;  %v1130_v7 = vadd.f32 %v1424_v6, %v1879_v45 }
 0x23c   : > { %1176 = vst [vmem:[%s1882_s13 + $0xd8] sm:$0xff] %v1130_v7  ;;  %v1425_v8 = vpop.f32.mrb[52].mxu1 }
 0x23d   : > { %v1426_v9 = vpop.f32.mrb[53].mxu1 }
 0x23e   : > { %v1427_v10 = vadd.f32 %v1426_v9, %v1425_v8  ;;  %v1428_v11 = vpop.f32.mrb[54].mxu1 }
 0x23f   : > { %v1429_v12 = vpop.f32.mrb[55].mxu1 }
 0x240   : > { %v1135_v13 = vadd.f32 %v1427_v10, %v1879_v45  ;;  %v1430_v14 = vadd.f32 %v1429_v12, %v1428_v11 }
 0x242   : > { %1177 = vst [vmem:[%s1882_s13 + $0xe0] sm:$0xff] %v1135_v13  ;;  %v1138_v15 = vadd.f32 %v1430_v14, %v1879_v45 }
 0x244   : > { %1178 = vst [vmem:[%s1882_s13 + $0xe8] sm:$0xff] %v1138_v15  ;;  %v1431_v16 = vpop.f32.mrb[56].mxu1 }
 0x245   : > { %v1432_v17 = vpop.f32.mrb[57].mxu1 }
 0x246   : > { %v1433_v18 = vadd.f32 %v1432_v17, %v1431_v16  ;;  %v1434_v19 = vpop.f32.mrb[58].mxu1 }
 0x247   : > { %v1435_v20 = vpop.f32.mrb[59].mxu1 }
 0x248   : > { %v1143_v44 = vadd.f32 %v1433_v18, %v1879_v45  ;;  %v1436_v21 = vadd.f32 %v1435_v20, %v1434_v19 }
 0x24a   : > { %1179 = vst [vmem:[%s1882_s13 + $0xf0] sm:$0xff] %v1143_v44  ;;  %v1146_v22 = vadd.f32 %v1436_v21, %v1879_v45 }
 0x24c   : > { %1180 = vst [vmem:[%s1882_s13 + $0xf8] sm:$0xff] %v1146_v22 }
 0x24d   : > { %1549 = shalt.err (!%p1546_p3)
}
 0x24e   : > { %s1550_s9 = scalar_lea.hbm %s1949_s23, 4096  ;;  %s1554_s7 = scalar_lea.hbm %s2004_s5, 8192 }
 0x24f   : > { %p1551_p4 = scmp.ne.s32.totalorder %s1949_s23, %s1550_s9  ;;  %p1555_p9 = scmp.lt.u32.totalorder %s1949_s23, %s2004_s5 }
 0x250   : > { %p1556_p10 = scmp.lt.u32.totalorder %s1554_s7, %s1550_s9  ;;  %p1558_p12 = scmp.lt.u32.totalorder %s1550_s9, %s1949_s23 }
 0x251   : > { %p1552_p7 = pnand %p1551_p4, %p1672_p5 }
 0x252   : > { %p1557_p11 = por %p1556_p10, %p1555_p9 }
 0x253   : > { %p1553_p8 = pneg %p1552_p7 }
 0x254   : > { %p1559_p13 = por %p1558_p12, %p1557_p11 }
 0x256   : > { %p1560_p0 = pnand %p1559_p13, %p1553_p8 }
 0x258   : > { %1563 = shalt.err (!%p1560_p0)
}
 0x259   : > { %s1602_s13 = smov 128   ;;  %s1603_s14 = smov 8  }
 0x25a   : > { %1453 = dma.vmem_to_hbm [thread:$0]  (%p1672_p5), %s1951_s15, 4096, %s1949_s23, %s1958_s22, %s1602_s13, %s1602_s13, %s1603_s14  }
 0x25b PF: > { %p1459_p1 = scmp.ge.s32.totalorder %s1598_s21, 2  ;;  %s1210_s16 = sand.u32 1, %s1586_s18  }
 0x25c   : > { %s1211_s17 = scalar_lea.sflag [#allocation3], %s1210_s16 }
 0x25d   : > { %p1456_p2 = pnand %p1459_p1, %p1676_p6 }
 0x25f   : > { %1581 = dma.done.wait (!%p1456_p2), %s1211_s17, 4096  }
 0x260   : > { %1583 = vsyncadd (!%p1456_p2), %s1211_s17, 4294963200  ;;  %p15_p3 = scmp.ge.s32.totalorder %s1659_s24, 4   ;;  %s2007_s18 = smov %s1590_s19 }
 0x261   : > { %s2008_s19 = smov %s1594_s20  ;;  %s2009_s20 = smov %s1670_s27 }
 0x262   : > { %s2010_s21 = smov %s1659_s24  ;;  %17 = sbr.rel (!%p15_p3) target bundleno = 3 (0x3), region = 75 }
 0x269   :  { %1216 = vsyncpa [#allocation3], 1 }
 0x26a   :  { %1218 = vsyncpa [#allocation3 + $0x1], 1 }

</bundles_post_ra>
